<compile_context>
chip_gen: v7x
topology: tpu7x:2x2x1
jax: 0.10.0
libtpu: 0.0.40
codegen_flags: <defaults>
</compile_context>

<pallas_src>
import jax
import jax.numpy as jnp
from jax import lax
from jax.experimental import pallas as pl
from jax.experimental.pallas import tpu as pltpu

EPS = 1e-5      # PyTorch GroupNorm default eps
GROUPS = 8


def _group_norm_silu(x, gamma, beta, m_avg):
    """GroupNorm(GROUPS)+SiLU. x: (C, P) f32; gamma/beta: (C,1); m_avg: (C,C)."""
    s1 = jnp.mean(x, axis=1, keepdims=True)                            # per-channel mean (C,1)
    gmean = jnp.dot(m_avg, s1, preferred_element_type=jnp.float32)     # per-group mean per channel
    xc = x - gmean
    m2 = jnp.mean(xc * xc, axis=1, keepdims=True)                      # centered 2nd moment (C,1)
    gvar = jnp.dot(m_avg, m2, preferred_element_type=jnp.float32)      # biased group variance
    inv = lax.rsqrt(gvar + EPS)
    y = xc * inv * gamma + beta
    return y * jax.nn.sigmoid(y)                                       # SiLU


def _make_kernel(H, W, has_res_conv):
    P = H * W
    PAD = W + 1                                   # flat zero-pad handles the vertical halo

    def kernel(x_ref, temb_ref, w1_ref, b1_ref, g1_ref, be1_ref,
               w2_ref, b2_ref, g2_ref, be2_ref, wt_ref, bt_ref, *rest):
        if has_res_conv:
            wr_ref, br_ref, mavg_ref, out_ref = rest
        else:
            mavg_ref, out_ref = rest

        BB = x_ref.shape[0]
        Cout = out_ref.shape[1]
        bf16, f32 = jnp.bfloat16, jnp.float32

        # Column-validity masks for the horizontal halo (hoisted out of all loops).
        col = lax.broadcasted_iota(jnp.int32, (1, P), 1) % W
        mask_l = (col >= 1).astype(bf16)          # dx == 0 taps
        mask_r = (col <= W - 2).astype(bf16)      # dx == 2 taps
        m_avg = mavg_ref[...]

        def conv3x3(xc_bf, w_ref, b_vec):
            # xc_bf: (C, P) bf16; w_ref: (9, Cout, C) bf16 -> (Cout, P) f32
            c = xc_bf.shape[0]
            zpad = jnp.zeros((c, PAD), bf16)
            xp = jnp.concatenate([zpad, xc_bf, zpad], axis=1)          # (C, P + 2W + 2)
            acc = jnp.zeros((Cout, P), f32)
            for dy in range(3):
                for dx in range(3):
                    start = dy * W + dx                                # static lane offset
                    tap = xp[:, start:start + P]
                    if dx == 0:
                        tap = tap * mask_l
                    elif dx == 2:
                        tap = tap * mask_r
                    acc = acc + jnp.dot(w_ref[dy * 3 + dx], tap,
                                        preferred_element_type=f32)
            return acc + b_vec

        for b in range(BB):                                            # static unroll (BB <= 2)
            xb = x_ref[b]                                              # (Cin, P) f32
            xb_bf = xb.astype(bf16)

            # block1: conv3x3 -> GN(8) -> SiLU
            h = conv3x3(xb_bf, w1_ref, b1_ref[...])
            h = _group_norm_silu(h, g1_ref[...], be1_ref[...], m_avg)

            # time embedding projection (f32), broadcast over the spatial lanes
            tproj = jnp.dot(wt_ref[...], temb_ref[b],
                            preferred_element_type=f32) + bt_ref[...]  # (Cout, 1)
            h = h + tproj

            # block2: conv3x3 -> GN(8) -> SiLU
            h2 = conv3x3(h.astype(bf16), w2_ref, b2_ref[...])
            h2 = _group_norm_silu(h2, g2_ref[...], be2_ref[...], m_avg)

            # residual path
            if has_res_conv:
                res = jnp.dot(wr_ref[...], xb,
                              preferred_element_type=f32) + br_ref[...]
            else:
                res = xb                                               # exact f32 identity skip

            out_ref[b] = (h2 + res).astype(out_ref.dtype)              # lane-dense (Cout, P) store

    return kernel


def resblock_forward(x_nchw, t_emb, params, block_b=None):
    """x_nchw: (B, Cin, H, W) f32; t_emb: (B, Tdim) f32 -> (B, Cout, H, W) f32."""
    B, Cin, H, W = x_nchw.shape
    Cout = params["w1"].shape[0]
    Tdim = t_emb.shape[1]
    P = H * W

    if block_b is None:
        # keep >=2 grid steps for v7x's two TensorCores; larger blocks for larger batches
        block_b = 1 if B <= 2 else (2 if B % 2 == 0 else 1)
    BB = block_b
    assert B % BB == 0

    f32, bf16 = jnp.float32, jnp.bfloat16
    has_res_conv = params.get("wr") is not None
    if not has_res_conv:
        assert Cin == Cout

    # ---- layout glue (pure reshapes + tiny weight re-packs, no big HBM transposes) ----
    x_flat = x_nchw.reshape(B, Cin, P)                       # NCHW -> (B, Cin, H*W)
    temb3 = t_emb[:, :, None]                                # (B, Tdim, 1)

    w1 = jnp.transpose(params["w1"], (2, 3, 0, 1)).reshape(9, Cout, Cin).astype(bf16)
    w2 = jnp.transpose(params["w2"], (2, 3, 0, 1)).reshape(9, Cout, Cout).astype(bf16)
    wt = params["wt"].astype(f32)                            # (Cout, Tdim) torch Linear layout
    cvec = lambda v: v.reshape(Cout, 1).astype(f32)

    # GroupNorm within-group averaging matrix, precomputed (hoisted out of the kernel).
    cpg = Cout // GROUPS
    m_avg = jnp.kron(jnp.eye(GROUPS, dtype=f32), jnp.ones((cpg, cpg), f32)) / cpg

    full2 = lambda i: (0, 0)
    full3 = lambda i: (0, 0, 0)

    in_arrays = [x_flat, temb3,
                 w1, cvec(params["b1"]), cvec(params["g1"]), cvec(params["be1"]),
                 w2, cvec(params["b2"]), cvec(params["g2"]), cvec(params["be2"]),
                 wt, cvec(params["bt"])]
    in_specs = [
        pl.BlockSpec((BB, Cin, P), lambda i: (i, 0, 0)),
        pl.BlockSpec((BB, Tdim, 1), lambda i: (i, 0, 0)),
        pl.BlockSpec((9, Cout, Cin), full3),
        pl.BlockSpec((Cout, 1), full2),
        pl.BlockSpec((Cout, 1), full2),
        pl.BlockSpec((Cout, 1), full2),
        pl.BlockSpec((9, Cout, Cout), full3),
        pl.BlockSpec((Cout, 1), full2),
        pl.BlockSpec((Cout, 1), full2),
        pl.BlockSpec((Cout, 1), full2),
        pl.BlockSpec((Cout, Tdim), full2),
        pl.BlockSpec((Cout, 1), full2),
    ]
    if has_res_conv:
        wr = params["wr"][:, :, 0, 0].astype(f32)            # (Cout, Cin), f32 residual conv
        in_arrays += [wr, cvec(params["br"])]
        in_specs += [pl.BlockSpec((Cout, Cin), full2), pl.BlockSpec((Cout, 1), full2)]
    in_arrays.append(m_avg)
    in_specs.append(pl.BlockSpec((Cout, Cout), full2))

    out_flat = pl.pallas_call(
        _make_kernel(H, W, has_res_conv),
        out_shape=jax.ShapeDtypeStruct((B, Cout, P), f32),
        grid=(B // BB,),
        in_specs=in_specs,
        out_specs=pl.BlockSpec((BB, Cout, P), lambda i: (i, 0, 0)),
        compiler_params=pltpu.CompilerParams(dimension_semantics=("parallel",)),
    )(*in_arrays)
    return out_flat.reshape(B, Cout, H, W)


# ---------------- pure-JAX reference (mirrors the PyTorch forward, f32 HIGHEST) ----------------
def ref_forward(x, t_emb, p):
    hp = lax.Precision.HIGHEST

    def conv3(x, w, b):
        y = lax.conv_general_dilated(x, w, (1, 1), ((1, 1), (1, 1)),
                                     dimension_numbers=("NCHW", "OIHW", "NCHW"),
                                     precision=hp)
        return y + b.reshape(1, -1, 1, 1)

    def gn(x, gamma, beta):
        B, C, H, W = x.shape
        xg = x.reshape(B, GROUPS, C // GROUPS, H, W)
        m = xg.mean(axis=(2, 3, 4), keepdims=True)
        v = ((xg - m) ** 2).mean(axis=(2, 3, 4), keepdims=True)
        xn = ((xg - m) / jnp.sqrt(v + EPS)).reshape(B, C, H, W)
        return xn * gamma.reshape(1, -1, 1, 1) + beta.reshape(1, -1, 1, 1)

    silu = lambda z: z * jax.nn.sigmoid(z)
    h = silu(gn(conv3(x, p["w1"], p["b1"]), p["g1"], p["be1"]))
    t = jnp.dot(t_emb, p["wt"].T, precision=hp) + p["bt"]
    h = h + t[:, :, None, None]
    h = silu(gn(conv3(h, p["w2"], p["b2"]), p["g2"], p["be2"]))
    if p.get("wr") is None:
        res = x
    else:
        res = lax.conv_general_dilated(x, p["wr"], (1, 1), ((0, 0), (0, 0)),
                                       dimension_numbers=("NCHW", "OIHW", "NCHW"),
                                       precision=hp) + p["br"].reshape(1, -1, 1, 1)
    return h + res


if __name__ == "__main__":
    # Small shapes consistent with the module: in_ch=4, out_ch=16 (divisible by 8 groups).
    B, Cin, Cout, H, W, Tdim = 2, 4, 16, 16, 16, 32
    # TODO(synk): dropout=0.1 is declared in __init__ but never used in forward(); omitted.

    key = jax.random.PRNGKey(0)
    ks = jax.random.split(key, 16)
    f32 = jnp.float32
    params = {
        "w1": 0.1 * jax.random.normal(ks[0], (Cout, Cin, 3, 3), f32),
        "b1": 0.1 * jax.random.normal(ks[1], (Cout,), f32),
        "g1": 1.0 + 0.1 * jax.random.normal(ks[2], (Cout,), f32),
        "be1": 0.1 * jax.random.normal(ks[3], (Cout,), f32),
        "w2": 0.1 * jax.random.normal(ks[4], (Cout, Cout, 3, 3), f32),
        "b2": 0.1 * jax.random.normal(ks[5], (Cout,), f32),
        "g2": 1.0 + 0.1 * jax.random.normal(ks[6], (Cout,), f32),
        "be2": 0.1 * jax.random.normal(ks[7], (Cout,), f32),
        "wt": 0.1 * jax.random.normal(ks[8], (Cout, Tdim), f32),   # torch Linear weight layout
        "bt": 0.1 * jax.random.normal(ks[9], (Cout,), f32),
        "wr": 0.1 * jax.random.normal(ks[10], (Cout, Cin, 1, 1), f32),
        "br": 0.1 * jax.random.normal(ks[11], (Cout,), f32),
    }
    x = jax.random.normal(ks[14], (B, Cin, H, W), f32)
    t_emb = jax.random.normal(ks[15], (B, Tdim), f32)

    # ---- 1x1-residual-conv path (in_ch != out_ch) ----
    out = jax.block_until_ready(resblock_forward(x, t_emb, params))
    ref = jax.block_until_ready(ref_forward(x, t_emb, params))
    assert out.shape == (B, Cout, H, W), out.shape
    err = float(jnp.max(jnp.abs(out - ref)))
    # Convs use bf16 MXU inputs with f32 accumulation; reference is f32 HIGHEST.
    assert err < 5e-2, f"max abs error {err}"

    # ---- identity-residual fast path (in_ch == out_ch -> nn.Identity) ----
    params_id = dict(params)
    params_id["w1"] = 0.1 * jax.random.normal(ks[12], (Cout, Cout, 3, 3), f32)
    params_id["wr"] = None
    params_id["br"] = None
    x2 = jax.random.normal(ks[13], (B, Cout, H, W), f32)
    out2 = jax.block_until_ready(resblock_forward(x2, t_emb, params_id))
    ref2 = jax.block_until_ready(ref_forward(x2, t_emb, params_id))
    err2 = float(jnp.max(jnp.abs(out2 - ref2)))
    assert err2 < 5e-2, f"identity-path max abs error {err2}"

    print("KERNEL_OK")
</pallas_src>

<mosaic_0001>
module attributes {stable_mosaic.version = 11 : i64} {
  func.func @kernel(%arg0: i32, %arg1: memref<1x4x256xf32, #tpu.memory_space<vmem>>, %arg2: memref<1x32x1xf32, #tpu.memory_space<vmem>>, %arg3: memref<9x16x4xbf16, #tpu.memory_space<vmem>>, %arg4: memref<16x1xf32, #tpu.memory_space<vmem>>, %arg5: memref<16x1xf32, #tpu.memory_space<vmem>>, %arg6: memref<16x1xf32, #tpu.memory_space<vmem>>, %arg7: memref<9x16x16xbf16, #tpu.memory_space<vmem>>, %arg8: memref<16x1xf32, #tpu.memory_space<vmem>>, %arg9: memref<16x1xf32, #tpu.memory_space<vmem>>, %arg10: memref<16x1xf32, #tpu.memory_space<vmem>>, %arg11: memref<16x32xf32, #tpu.memory_space<vmem>>, %arg12: memref<16x1xf32, #tpu.memory_space<vmem>>, %arg13: memref<16x4xf32, #tpu.memory_space<vmem>>, %arg14: memref<16x1xf32, #tpu.memory_space<vmem>>, %arg15: memref<16x16xf32, #tpu.memory_space<vmem>>, %arg16: memref<1x16x256xf32, #tpu.memory_space<vmem>>) attributes {dimension_semantics = [#tpu.dimension_semantics<parallel>], iteration_bounds = array<i64: 2>, scalar_prefetch = 0 : i64, scratch_operands = 0 : i64, tpu.core_type = #tpu.core_type<tc>, window_params = [{transform_indices = @transform_0, window_bounds = array<i64: 1, 4, 256>}, {transform_indices = @transform_1, window_bounds = array<i64: 1, 32, 1>}, {pipeline_mode = #tpu.pipeline_mode<synchronous>, transform_indices = @transform_2, window_bounds = array<i64: 9, 16, 4>}, {pipeline_mode = #tpu.pipeline_mode<synchronous>, transform_indices = @transform_3, window_bounds = array<i64: 16, 1>}, {pipeline_mode = #tpu.pipeline_mode<synchronous>, transform_indices = @transform_4, window_bounds = array<i64: 16, 1>}, {pipeline_mode = #tpu.pipeline_mode<synchronous>, transform_indices = @transform_5, window_bounds = array<i64: 16, 1>}, {pipeline_mode = #tpu.pipeline_mode<synchronous>, transform_indices = @transform_6, window_bounds = array<i64: 9, 16, 16>}, {pipeline_mode = #tpu.pipeline_mode<synchronous>, transform_indices = @transform_7, window_bounds = array<i64: 16, 1>}, {pipeline_mode = #tpu.pipeline_mode<synchronous>, transform_indices = @transform_8, window_bounds = array<i64: 16, 1>}, {pipeline_mode = #tpu.pipeline_mode<synchronous>, transform_indices = @transform_9, window_bounds = array<i64: 16, 1>}, {pipeline_mode = #tpu.pipeline_mode<synchronous>, transform_indices = @transform_10, window_bounds = array<i64: 16, 32>}, {pipeline_mode = #tpu.pipeline_mode<synchronous>, transform_indices = @transform_11, window_bounds = array<i64: 16, 1>}, {pipeline_mode = #tpu.pipeline_mode<synchronous>, transform_indices = @transform_12, window_bounds = array<i64: 16, 4>}, {pipeline_mode = #tpu.pipeline_mode<synchronous>, transform_indices = @transform_13, window_bounds = array<i64: 16, 1>}, {pipeline_mode = #tpu.pipeline_mode<synchronous>, transform_indices = @transform_14, window_bounds = array<i64: 16, 16>}, {transform_indices = @transform_15, window_bounds = array<i64: 1, 16, 256>}]} {
    %0 = tpu.iota {dimensions = array<i32: 1>} : vector<1x256xi32>
    %c16_i32 = arith.constant 16 : i32
    %c0_i32 = arith.constant 0 : i32
    %1 = arith.cmpi eq, %c16_i32, %c0_i32 : i32
    %c1_i32 = arith.constant 1 : i32
    %2 = arith.select %1, %c1_i32, %c16_i32 : i32
    %3 = vector.broadcast %2 : i32 to vector<1x256xi32>
    %4 = arith.remsi %0, %3 : vector<1x256xi32>
    %c0_i32_0 = arith.constant 0 : i32
    %5 = vector.broadcast %c0_i32_0 : i32 to vector<1x256xi32>
    %6 = arith.cmpi ne, %4, %5 : vector<1x256xi32>
    %c0_i32_1 = arith.constant 0 : i32
    %7 = vector.broadcast %c0_i32_1 : i32 to vector<1x256xi32>
    %8 = arith.cmpi slt, %4, %7 : vector<1x256xi32>
    %c0_i32_2 = arith.constant 0 : i32
    %9 = arith.cmpi slt, %2, %c0_i32_2 : i32
    %10 = vector.broadcast %9 : i1 to vector<1x256xi1>
    %11 = vector.broadcast %10 : vector<1x256xi1> to vector<1x256xi1>
    %12 = arith.xori %8, %11 : vector<1x256xi1>
    %13 = arith.andi %12, %6 : vector<1x256xi1>
    %14 = vector.broadcast %2 : i32 to vector<1x256xi32>
    %15 = arith.addi %4, %14 : vector<1x256xi32>
    %16 = arith.select %13, %15, %4 : vector<1x256xi1>, vector<1x256xi32>
    %c1_i32_3 = arith.constant 1 : i32
    %17 = vector.broadcast %c1_i32_3 : i32 to vector<1x256xi32>
    %18 = arith.cmpi sge, %16, %17 : vector<1x256xi32>
    %19 = arith.extui %18 : vector<1x256xi1> to vector<1x256xi32>
    %20 = arith.sitofp %19 : vector<1x256xi32> to vector<1x256xf32>
    %21 = arith.truncf %20 : vector<1x256xf32> to vector<1x256xbf16>
    %c14_i32 = arith.constant 14 : i32
    %22 = vector.broadcast %c14_i32 : i32 to vector<1x256xi32>
    %23 = arith.cmpi sle, %16, %22 : vector<1x256xi32>
    %24 = arith.extui %23 : vector<1x256xi1> to vector<1x256xi32>
    %25 = arith.sitofp %24 : vector<1x256xi32> to vector<1x256xf32>
    %26 = arith.truncf %25 : vector<1x256xf32> to vector<1x256xbf16>
    %c0 = arith.constant 0 : index
    %c0_4 = arith.constant 0 : index
    %27 = vector.load %arg15[%c0, %c0_4] : memref<16x16xf32, #tpu.memory_space<vmem>>, vector<16x16xf32>
    %c0_5 = arith.constant 0 : index
    %c0_6 = arith.constant 0 : index
    %c0_7 = arith.constant 0 : index
    %28 = vector.load %arg1[%c0_5, %c0_6, %c0_7] : memref<1x4x256xf32, #tpu.memory_space<vmem>>, vector<1x4x256xf32>
    %29 = vector.shape_cast %28 : vector<1x4x256xf32> to vector<4x256xf32>
    %30 = arith.truncf %29 : vector<4x256xf32> to vector<4x256xbf16>
    %c0_8 = arith.constant 0 : index
    %c0_9 = arith.constant 0 : index
    %31 = vector.load %arg4[%c0_8, %c0_9] : memref<16x1xf32, #tpu.memory_space<vmem>>, vector<16x1xf32>
    %cst = arith.constant 0.000000e+00 : bf16
    %32 = vector.broadcast %cst : bf16 to vector<4x17xbf16>
    %33 = tpu.concatenate %32, %30, %32 in 1 : vector<4x17xbf16>, vector<4x256xbf16>, vector<4x17xbf16> -> vector<4x290xbf16>
    %cst_10 = arith.constant 0.000000e+00 : f32
    %34 = vector.broadcast %cst_10 : f32 to vector<16x256xf32>
    %35 = vector.extract_strided_slice %33 {offsets = [0, 0], sizes = [4, 256], strides = [1, 1]} : vector<4x290xbf16> to vector<4x256xbf16>
    %36 = vector.broadcast %21 : vector<1x256xbf16> to vector<4x256xbf16>
    %37 = arith.mulf %35, %36 : vector<4x256xbf16>
    %c0_11 = arith.constant 0 : index
    %c0_12 = arith.constant 0 : index
    %c0_13 = arith.constant 0 : index
    %38 = vector.load %arg3[%c0_11, %c0_12, %c0_13] : memref<9x16x4xbf16, #tpu.memory_space<vmem>>, vector<1x16x4xbf16>
    %39 = vector.shape_cast %38 : vector<1x16x4xbf16> to vector<16x4xbf16>
    %cst_14 = arith.constant dense<0.000000e+00> : vector<16x256xf32>
    %40 = tpu.matmul %39, %37, %cst_14 {dimension_numbers = #tpu.dot_dimension_numbers<[1], [0], [0], [1], [0, 0, 1, 1], [], []>} : vector<16x4xbf16>, vector<4x256xbf16>, vector<16x256xf32> -> vector<16x256xf32>
    %41 = arith.addf %34, %40 : vector<16x256xf32>
    %42 = vector.extract_strided_slice %33 {offsets = [0, 1], sizes = [4, 256], strides = [1, 1]} : vector<4x290xbf16> to vector<4x256xbf16>
    %c1 = arith.constant 1 : index
    %c0_15 = arith.constant 0 : index
    %c0_16 = arith.constant 0 : index
    %43 = vector.load %arg3[%c1, %c0_15, %c0_16] : memref<9x16x4xbf16, #tpu.memory_space<vmem>>, vector<1x16x4xbf16>
    %44 = vector.shape_cast %43 : vector<1x16x4xbf16> to vector<16x4xbf16>
    %cst_17 = arith.constant dense<0.000000e+00> : vector<16x256xf32>
    %45 = tpu.matmul %44, %42, %cst_17 {dimension_numbers = #tpu.dot_dimension_numbers<[1], [0], [0], [1], [0, 0, 1, 1], [], []>} : vector<16x4xbf16>, vector<4x256xbf16>, vector<16x256xf32> -> vector<16x256xf32>
    %46 = arith.addf %41, %45 : vector<16x256xf32>
    %47 = vector.extract_strided_slice %33 {offsets = [0, 2], sizes = [4, 256], strides = [1, 1]} : vector<4x290xbf16> to vector<4x256xbf16>
    %48 = vector.broadcast %26 : vector<1x256xbf16> to vector<4x256xbf16>
    %49 = arith.mulf %47, %48 : vector<4x256xbf16>
    %c2 = arith.constant 2 : index
    %c0_18 = arith.constant 0 : index
    %c0_19 = arith.constant 0 : index
    %50 = vector.load %arg3[%c2, %c0_18, %c0_19] : memref<9x16x4xbf16, #tpu.memory_space<vmem>>, vector<1x16x4xbf16>
    %51 = vector.shape_cast %50 : vector<1x16x4xbf16> to vector<16x4xbf16>
    %cst_20 = arith.constant dense<0.000000e+00> : vector<16x256xf32>
    %52 = tpu.matmul %51, %49, %cst_20 {dimension_numbers = #tpu.dot_dimension_numbers<[1], [0], [0], [1], [0, 0, 1, 1], [], []>} : vector<16x4xbf16>, vector<4x256xbf16>, vector<16x256xf32> -> vector<16x256xf32>
    %53 = arith.addf %46, %52 : vector<16x256xf32>
    %54 = vector.extract_strided_slice %33 {offsets = [0, 16], sizes = [4, 256], strides = [1, 1]} : vector<4x290xbf16> to vector<4x256xbf16>
    %55 = vector.broadcast %21 : vector<1x256xbf16> to vector<4x256xbf16>
    %56 = arith.mulf %54, %55 : vector<4x256xbf16>
    %c3 = arith.constant 3 : index
    %c0_21 = arith.constant 0 : index
    %c0_22 = arith.constant 0 : index
    %57 = vector.load %arg3[%c3, %c0_21, %c0_22] : memref<9x16x4xbf16, #tpu.memory_space<vmem>>, vector<1x16x4xbf16>
    %58 = vector.shape_cast %57 : vector<1x16x4xbf16> to vector<16x4xbf16>
    %cst_23 = arith.constant dense<0.000000e+00> : vector<16x256xf32>
    %59 = tpu.matmul %58, %56, %cst_23 {dimension_numbers = #tpu.dot_dimension_numbers<[1], [0], [0], [1], [0, 0, 1, 1], [], []>} : vector<16x4xbf16>, vector<4x256xbf16>, vector<16x256xf32> -> vector<16x256xf32>
    %60 = arith.addf %53, %59 : vector<16x256xf32>
    %61 = vector.extract_strided_slice %33 {offsets = [0, 17], sizes = [4, 256], strides = [1, 1]} : vector<4x290xbf16> to vector<4x256xbf16>
    %c4 = arith.constant 4 : index
    %c0_24 = arith.constant 0 : index
    %c0_25 = arith.constant 0 : index
    %62 = vector.load %arg3[%c4, %c0_24, %c0_25] : memref<9x16x4xbf16, #tpu.memory_space<vmem>>, vector<1x16x4xbf16>
    %63 = vector.shape_cast %62 : vector<1x16x4xbf16> to vector<16x4xbf16>
    %cst_26 = arith.constant dense<0.000000e+00> : vector<16x256xf32>
    %64 = tpu.matmul %63, %61, %cst_26 {dimension_numbers = #tpu.dot_dimension_numbers<[1], [0], [0], [1], [0, 0, 1, 1], [], []>} : vector<16x4xbf16>, vector<4x256xbf16>, vector<16x256xf32> -> vector<16x256xf32>
    %65 = arith.addf %60, %64 : vector<16x256xf32>
    %66 = vector.extract_strided_slice %33 {offsets = [0, 18], sizes = [4, 256], strides = [1, 1]} : vector<4x290xbf16> to vector<4x256xbf16>
    %67 = vector.broadcast %26 : vector<1x256xbf16> to vector<4x256xbf16>
    %68 = arith.mulf %66, %67 : vector<4x256xbf16>
    %c5 = arith.constant 5 : index
    %c0_27 = arith.constant 0 : index
    %c0_28 = arith.constant 0 : index
    %69 = vector.load %arg3[%c5, %c0_27, %c0_28] : memref<9x16x4xbf16, #tpu.memory_space<vmem>>, vector<1x16x4xbf16>
    %70 = vector.shape_cast %69 : vector<1x16x4xbf16> to vector<16x4xbf16>
    %cst_29 = arith.constant dense<0.000000e+00> : vector<16x256xf32>
    %71 = tpu.matmul %70, %68, %cst_29 {dimension_numbers = #tpu.dot_dimension_numbers<[1], [0], [0], [1], [0, 0, 1, 1], [], []>} : vector<16x4xbf16>, vector<4x256xbf16>, vector<16x256xf32> -> vector<16x256xf32>
    %72 = arith.addf %65, %71 : vector<16x256xf32>
    %73 = vector.extract_strided_slice %33 {offsets = [0, 32], sizes = [4, 256], strides = [1, 1]} : vector<4x290xbf16> to vector<4x256xbf16>
    %74 = vector.broadcast %21 : vector<1x256xbf16> to vector<4x256xbf16>
    %75 = arith.mulf %73, %74 : vector<4x256xbf16>
    %c6 = arith.constant 6 : index
    %c0_30 = arith.constant 0 : index
    %c0_31 = arith.constant 0 : index
    %76 = vector.load %arg3[%c6, %c0_30, %c0_31] : memref<9x16x4xbf16, #tpu.memory_space<vmem>>, vector<1x16x4xbf16>
    %77 = vector.shape_cast %76 : vector<1x16x4xbf16> to vector<16x4xbf16>
    %cst_32 = arith.constant dense<0.000000e+00> : vector<16x256xf32>
    %78 = tpu.matmul %77, %75, %cst_32 {dimension_numbers = #tpu.dot_dimension_numbers<[1], [0], [0], [1], [0, 0, 1, 1], [], []>} : vector<16x4xbf16>, vector<4x256xbf16>, vector<16x256xf32> -> vector<16x256xf32>
    %79 = arith.addf %72, %78 : vector<16x256xf32>
    %80 = vector.extract_strided_slice %33 {offsets = [0, 33], sizes = [4, 256], strides = [1, 1]} : vector<4x290xbf16> to vector<4x256xbf16>
    %c7 = arith.constant 7 : index
    %c0_33 = arith.constant 0 : index
    %c0_34 = arith.constant 0 : index
    %81 = vector.load %arg3[%c7, %c0_33, %c0_34] : memref<9x16x4xbf16, #tpu.memory_space<vmem>>, vector<1x16x4xbf16>
    %82 = vector.shape_cast %81 : vector<1x16x4xbf16> to vector<16x4xbf16>
    %cst_35 = arith.constant dense<0.000000e+00> : vector<16x256xf32>
    %83 = tpu.matmul %82, %80, %cst_35 {dimension_numbers = #tpu.dot_dimension_numbers<[1], [0], [0], [1], [0, 0, 1, 1], [], []>} : vector<16x4xbf16>, vector<4x256xbf16>, vector<16x256xf32> -> vector<16x256xf32>
    %84 = arith.addf %79, %83 : vector<16x256xf32>
    %85 = vector.extract_strided_slice %33 {offsets = [0, 34], sizes = [4, 256], strides = [1, 1]} : vector<4x290xbf16> to vector<4x256xbf16>
    %86 = vector.broadcast %26 : vector<1x256xbf16> to vector<4x256xbf16>
    %87 = arith.mulf %85, %86 : vector<4x256xbf16>
    %c8 = arith.constant 8 : index
    %c0_36 = arith.constant 0 : index
    %c0_37 = arith.constant 0 : index
    %88 = vector.load %arg3[%c8, %c0_36, %c0_37] : memref<9x16x4xbf16, #tpu.memory_space<vmem>>, vector<1x16x4xbf16>
    %89 = vector.shape_cast %88 : vector<1x16x4xbf16> to vector<16x4xbf16>
    %cst_38 = arith.constant dense<0.000000e+00> : vector<16x256xf32>
    %90 = tpu.matmul %89, %87, %cst_38 {dimension_numbers = #tpu.dot_dimension_numbers<[1], [0], [0], [1], [0, 0, 1, 1], [], []>} : vector<16x4xbf16>, vector<4x256xbf16>, vector<16x256xf32> -> vector<16x256xf32>
    %91 = arith.addf %84, %90 : vector<16x256xf32>
    %92 = vector.broadcast %31 : vector<16x1xf32> to vector<16x256xf32>
    %93 = arith.addf %91, %92 : vector<16x256xf32>
    %c0_39 = arith.constant 0 : index
    %c0_40 = arith.constant 0 : index
    %94 = vector.load %arg5[%c0_39, %c0_40] : memref<16x1xf32, #tpu.memory_space<vmem>>, vector<16x1xf32>
    %c0_41 = arith.constant 0 : index
    %c0_42 = arith.constant 0 : index
    %95 = vector.load %arg6[%c0_41, %c0_42] : memref<16x1xf32, #tpu.memory_space<vmem>>, vector<16x1xf32>
    %cst_43 = arith.constant dense<0.000000e+00> : vector<16xf32>
    %96 = vector.multi_reduction <add>, %93, %cst_43 [1] : vector<16x256xf32> to vector<16xf32>
    %97 = vector.shape_cast %96 : vector<16xf32> to vector<16x1xf32>
    %cst_44 = arith.constant 2.560000e+02 : f32
    %98 = vector.broadcast %cst_44 : f32 to vector<16x1xf32>
    %99 = arith.divf %97, %98 : vector<16x1xf32>
    %cst_45 = arith.constant dense<0.000000e+00> : vector<16x1xf32>
    %100 = tpu.matmul %27, %99, %cst_45 {dimension_numbers = #tpu.dot_dimension_numbers<[1], [0], [0], [1], [0, 0, 1, 1], [], []>} : vector<16x16xf32>, vector<16x1xf32>, vector<16x1xf32> -> vector<16x1xf32>
    %101 = vector.broadcast %100 : vector<16x1xf32> to vector<16x256xf32>
    %102 = arith.subf %93, %101 : vector<16x256xf32>
    %103 = arith.mulf %102, %102 : vector<16x256xf32>
    %cst_46 = arith.constant dense<0.000000e+00> : vector<16xf32>
    %104 = vector.multi_reduction <add>, %103, %cst_46 [1] : vector<16x256xf32> to vector<16xf32>
    %105 = vector.shape_cast %104 : vector<16xf32> to vector<16x1xf32>
    %cst_47 = arith.constant 2.560000e+02 : f32
    %106 = vector.broadcast %cst_47 : f32 to vector<16x1xf32>
    %107 = arith.divf %105, %106 : vector<16x1xf32>
    %cst_48 = arith.constant dense<0.000000e+00> : vector<16x1xf32>
    %108 = tpu.matmul %27, %107, %cst_48 {dimension_numbers = #tpu.dot_dimension_numbers<[1], [0], [0], [1], [0, 0, 1, 1], [], []>} : vector<16x16xf32>, vector<16x1xf32>, vector<16x1xf32> -> vector<16x1xf32>
    %cst_49 = arith.constant 9.99999974E-6 : f32
    %109 = vector.broadcast %cst_49 : f32 to vector<16x1xf32>
    %110 = arith.addf %108, %109 : vector<16x1xf32>
    %111 = math.rsqrt %110 : vector<16x1xf32>
    %112 = vector.broadcast %111 : vector<16x1xf32> to vector<16x256xf32>
    %113 = arith.mulf %102, %112 : vector<16x256xf32>
    %114 = vector.broadcast %94 : vector<16x1xf32> to vector<16x256xf32>
    %115 = arith.mulf %113, %114 : vector<16x256xf32>
    %116 = vector.broadcast %95 : vector<16x1xf32> to vector<16x256xf32>
    %117 = arith.addf %115, %116 : vector<16x256xf32>
    %118 = arith.negf %117 : vector<16x256xf32>
    %119 = math.exp %118 : vector<16x256xf32>
    %cst_50 = arith.constant 1.000000e+00 : f32
    %120 = vector.broadcast %cst_50 : f32 to vector<16x256xf32>
    %121 = arith.addf %120, %119 : vector<16x256xf32>
    %122 = arith.divf %120, %121 : vector<16x256xf32>
    %123 = arith.mulf %117, %122 : vector<16x256xf32>
    %c0_51 = arith.constant 0 : index
    %c0_52 = arith.constant 0 : index
    %124 = vector.load %arg11[%c0_51, %c0_52] : memref<16x32xf32, #tpu.memory_space<vmem>>, vector<16x32xf32>
    %c0_53 = arith.constant 0 : index
    %c0_54 = arith.constant 0 : index
    %c0_55 = arith.constant 0 : index
    %125 = vector.load %arg2[%c0_53, %c0_54, %c0_55] : memref<1x32x1xf32, #tpu.memory_space<vmem>>, vector<1x32x1xf32>
    %126 = vector.shape_cast %125 : vector<1x32x1xf32> to vector<32x1xf32>
    %cst_56 = arith.constant dense<0.000000e+00> : vector<16x1xf32>
    %127 = tpu.matmul %124, %126, %cst_56 {dimension_numbers = #tpu.dot_dimension_numbers<[1], [0], [0], [1], [0, 0, 1, 1], [], []>} : vector<16x32xf32>, vector<32x1xf32>, vector<16x1xf32> -> vector<16x1xf32>
    %c0_57 = arith.constant 0 : index
    %c0_58 = arith.constant 0 : index
    %128 = vector.load %arg12[%c0_57, %c0_58] : memref<16x1xf32, #tpu.memory_space<vmem>>, vector<16x1xf32>
    %129 = arith.addf %127, %128 : vector<16x1xf32>
    %130 = vector.broadcast %129 : vector<16x1xf32> to vector<16x256xf32>
    %131 = arith.addf %123, %130 : vector<16x256xf32>
    %132 = arith.truncf %131 : vector<16x256xf32> to vector<16x256xbf16>
    %c0_59 = arith.constant 0 : index
    %c0_60 = arith.constant 0 : index
    %133 = vector.load %arg8[%c0_59, %c0_60] : memref<16x1xf32, #tpu.memory_space<vmem>>, vector<16x1xf32>
    %cst_61 = arith.constant 0.000000e+00 : bf16
    %134 = vector.broadcast %cst_61 : bf16 to vector<16x17xbf16>
    %135 = tpu.concatenate %134, %132, %134 in 1 : vector<16x17xbf16>, vector<16x256xbf16>, vector<16x17xbf16> -> vector<16x290xbf16>
    %cst_62 = arith.constant 0.000000e+00 : f32
    %136 = vector.broadcast %cst_62 : f32 to vector<16x256xf32>
    %137 = vector.extract_strided_slice %135 {offsets = [0, 0], sizes = [16, 256], strides = [1, 1]} : vector<16x290xbf16> to vector<16x256xbf16>
    %138 = vector.broadcast %21 : vector<1x256xbf16> to vector<16x256xbf16>
    %139 = arith.mulf %137, %138 : vector<16x256xbf16>
    %c0_63 = arith.constant 0 : index
    %c0_64 = arith.constant 0 : index
    %c0_65 = arith.constant 0 : index
    %140 = vector.load %arg7[%c0_63, %c0_64, %c0_65] : memref<9x16x16xbf16, #tpu.memory_space<vmem>>, vector<1x16x16xbf16>
    %141 = vector.shape_cast %140 : vector<1x16x16xbf16> to vector<16x16xbf16>
    %cst_66 = arith.constant dense<0.000000e+00> : vector<16x256xf32>
    %142 = tpu.matmul %141, %139, %cst_66 {dimension_numbers = #tpu.dot_dimension_numbers<[1], [0], [0], [1], [0, 0, 1, 1], [], []>} : vector<16x16xbf16>, vector<16x256xbf16>, vector<16x256xf32> -> vector<16x256xf32>
    %143 = arith.addf %136, %142 : vector<16x256xf32>
    %144 = vector.extract_strided_slice %135 {offsets = [0, 1], sizes = [16, 256], strides = [1, 1]} : vector<16x290xbf16> to vector<16x256xbf16>
    %c1_67 = arith.constant 1 : index
    %c0_68 = arith.constant 0 : index
    %c0_69 = arith.constant 0 : index
    %145 = vector.load %arg7[%c1_67, %c0_68, %c0_69] : memref<9x16x16xbf16, #tpu.memory_space<vmem>>, vector<1x16x16xbf16>
    %146 = vector.shape_cast %145 : vector<1x16x16xbf16> to vector<16x16xbf16>
    %cst_70 = arith.constant dense<0.000000e+00> : vector<16x256xf32>
    %147 = tpu.matmul %146, %144, %cst_70 {dimension_numbers = #tpu.dot_dimension_numbers<[1], [0], [0], [1], [0, 0, 1, 1], [], []>} : vector<16x16xbf16>, vector<16x256xbf16>, vector<16x256xf32> -> vector<16x256xf32>
    %148 = arith.addf %143, %147 : vector<16x256xf32>
    %149 = vector.extract_strided_slice %135 {offsets = [0, 2], sizes = [16, 256], strides = [1, 1]} : vector<16x290xbf16> to vector<16x256xbf16>
    %150 = vector.broadcast %26 : vector<1x256xbf16> to vector<16x256xbf16>
    %151 = arith.mulf %149, %150 : vector<16x256xbf16>
    %c2_71 = arith.constant 2 : index
    %c0_72 = arith.constant 0 : index
    %c0_73 = arith.constant 0 : index
    %152 = vector.load %arg7[%c2_71, %c0_72, %c0_73] : memref<9x16x16xbf16, #tpu.memory_space<vmem>>, vector<1x16x16xbf16>
    %153 = vector.shape_cast %152 : vector<1x16x16xbf16> to vector<16x16xbf16>
    %cst_74 = arith.constant dense<0.000000e+00> : vector<16x256xf32>
    %154 = tpu.matmul %153, %151, %cst_74 {dimension_numbers = #tpu.dot_dimension_numbers<[1], [0], [0], [1], [0, 0, 1, 1], [], []>} : vector<16x16xbf16>, vector<16x256xbf16>, vector<16x256xf32> -> vector<16x256xf32>
    %155 = arith.addf %148, %154 : vector<16x256xf32>
    %156 = vector.extract_strided_slice %135 {offsets = [0, 16], sizes = [16, 256], strides = [1, 1]} : vector<16x290xbf16> to vector<16x256xbf16>
    %157 = vector.broadcast %21 : vector<1x256xbf16> to vector<16x256xbf16>
    %158 = arith.mulf %156, %157 : vector<16x256xbf16>
    %c3_75 = arith.constant 3 : index
    %c0_76 = arith.constant 0 : index
    %c0_77 = arith.constant 0 : index
    %159 = vector.load %arg7[%c3_75, %c0_76, %c0_77] : memref<9x16x16xbf16, #tpu.memory_space<vmem>>, vector<1x16x16xbf16>
    %160 = vector.shape_cast %159 : vector<1x16x16xbf16> to vector<16x16xbf16>
    %cst_78 = arith.constant dense<0.000000e+00> : vector<16x256xf32>
    %161 = tpu.matmul %160, %158, %cst_78 {dimension_numbers = #tpu.dot_dimension_numbers<[1], [0], [0], [1], [0, 0, 1, 1], [], []>} : vector<16x16xbf16>, vector<16x256xbf16>, vector<16x256xf32> -> vector<16x256xf32>
    %162 = arith.addf %155, %161 : vector<16x256xf32>
    %163 = vector.extract_strided_slice %135 {offsets = [0, 17], sizes = [16, 256], strides = [1, 1]} : vector<16x290xbf16> to vector<16x256xbf16>
    %c4_79 = arith.constant 4 : index
    %c0_80 = arith.constant 0 : index
    %c0_81 = arith.constant 0 : index
    %164 = vector.load %arg7[%c4_79, %c0_80, %c0_81] : memref<9x16x16xbf16, #tpu.memory_space<vmem>>, vector<1x16x16xbf16>
    %165 = vector.shape_cast %164 : vector<1x16x16xbf16> to vector<16x16xbf16>
    %cst_82 = arith.constant dense<0.000000e+00> : vector<16x256xf32>
    %166 = tpu.matmul %165, %163, %cst_82 {dimension_numbers = #tpu.dot_dimension_numbers<[1], [0], [0], [1], [0, 0, 1, 1], [], []>} : vector<16x16xbf16>, vector<16x256xbf16>, vector<16x256xf32> -> vector<16x256xf32>
    %167 = arith.addf %162, %166 : vector<16x256xf32>
    %168 = vector.extract_strided_slice %135 {offsets = [0, 18], sizes = [16, 256], strides = [1, 1]} : vector<16x290xbf16> to vector<16x256xbf16>
    %169 = vector.broadcast %26 : vector<1x256xbf16> to vector<16x256xbf16>
    %170 = arith.mulf %168, %169 : vector<16x256xbf16>
    %c5_83 = arith.constant 5 : index
    %c0_84 = arith.constant 0 : index
    %c0_85 = arith.constant 0 : index
    %171 = vector.load %arg7[%c5_83, %c0_84, %c0_85] : memref<9x16x16xbf16, #tpu.memory_space<vmem>>, vector<1x16x16xbf16>
    %172 = vector.shape_cast %171 : vector<1x16x16xbf16> to vector<16x16xbf16>
    %cst_86 = arith.constant dense<0.000000e+00> : vector<16x256xf32>
    %173 = tpu.matmul %172, %170, %cst_86 {dimension_numbers = #tpu.dot_dimension_numbers<[1], [0], [0], [1], [0, 0, 1, 1], [], []>} : vector<16x16xbf16>, vector<16x256xbf16>, vector<16x256xf32> -> vector<16x256xf32>
    %174 = arith.addf %167, %173 : vector<16x256xf32>
    %175 = vector.extract_strided_slice %135 {offsets = [0, 32], sizes = [16, 256], strides = [1, 1]} : vector<16x290xbf16> to vector<16x256xbf16>
    %176 = vector.broadcast %21 : vector<1x256xbf16> to vector<16x256xbf16>
    %177 = arith.mulf %175, %176 : vector<16x256xbf16>
    %c6_87 = arith.constant 6 : index
    %c0_88 = arith.constant 0 : index
    %c0_89 = arith.constant 0 : index
    %178 = vector.load %arg7[%c6_87, %c0_88, %c0_89] : memref<9x16x16xbf16, #tpu.memory_space<vmem>>, vector<1x16x16xbf16>
    %179 = vector.shape_cast %178 : vector<1x16x16xbf16> to vector<16x16xbf16>
    %cst_90 = arith.constant dense<0.000000e+00> : vector<16x256xf32>
    %180 = tpu.matmul %179, %177, %cst_90 {dimension_numbers = #tpu.dot_dimension_numbers<[1], [0], [0], [1], [0, 0, 1, 1], [], []>} : vector<16x16xbf16>, vector<16x256xbf16>, vector<16x256xf32> -> vector<16x256xf32>
    %181 = arith.addf %174, %180 : vector<16x256xf32>
    %182 = vector.extract_strided_slice %135 {offsets = [0, 33], sizes = [16, 256], strides = [1, 1]} : vector<16x290xbf16> to vector<16x256xbf16>
    %c7_91 = arith.constant 7 : index
    %c0_92 = arith.constant 0 : index
    %c0_93 = arith.constant 0 : index
    %183 = vector.load %arg7[%c7_91, %c0_92, %c0_93] : memref<9x16x16xbf16, #tpu.memory_space<vmem>>, vector<1x16x16xbf16>
    %184 = vector.shape_cast %183 : vector<1x16x16xbf16> to vector<16x16xbf16>
    %cst_94 = arith.constant dense<0.000000e+00> : vector<16x256xf32>
    %185 = tpu.matmul %184, %182, %cst_94 {dimension_numbers = #tpu.dot_dimension_numbers<[1], [0], [0], [1], [0, 0, 1, 1], [], []>} : vector<16x16xbf16>, vector<16x256xbf16>, vector<16x256xf32> -> vector<16x256xf32>
    %186 = arith.addf %181, %185 : vector<16x256xf32>
    %187 = vector.extract_strided_slice %135 {offsets = [0, 34], sizes = [16, 256], strides = [1, 1]} : vector<16x290xbf16> to vector<16x256xbf16>
    %188 = vector.broadcast %26 : vector<1x256xbf16> to vector<16x256xbf16>
    %189 = arith.mulf %187, %188 : vector<16x256xbf16>
    %c8_95 = arith.constant 8 : index
    %c0_96 = arith.constant 0 : index
    %c0_97 = arith.constant 0 : index
    %190 = vector.load %arg7[%c8_95, %c0_96, %c0_97] : memref<9x16x16xbf16, #tpu.memory_space<vmem>>, vector<1x16x16xbf16>
    %191 = vector.shape_cast %190 : vector<1x16x16xbf16> to vector<16x16xbf16>
    %cst_98 = arith.constant dense<0.000000e+00> : vector<16x256xf32>
    %192 = tpu.matmul %191, %189, %cst_98 {dimension_numbers = #tpu.dot_dimension_numbers<[1], [0], [0], [1], [0, 0, 1, 1], [], []>} : vector<16x16xbf16>, vector<16x256xbf16>, vector<16x256xf32> -> vector<16x256xf32>
    %193 = arith.addf %186, %192 : vector<16x256xf32>
    %194 = vector.broadcast %133 : vector<16x1xf32> to vector<16x256xf32>
    %195 = arith.addf %193, %194 : vector<16x256xf32>
    %c0_99 = arith.constant 0 : index
    %c0_100 = arith.constant 0 : index
    %196 = vector.load %arg9[%c0_99, %c0_100] : memref<16x1xf32, #tpu.memory_space<vmem>>, vector<16x1xf32>
    %c0_101 = arith.constant 0 : index
    %c0_102 = arith.constant 0 : index
    %197 = vector.load %arg10[%c0_101, %c0_102] : memref<16x1xf32, #tpu.memory_space<vmem>>, vector<16x1xf32>
    %cst_103 = arith.constant dense<0.000000e+00> : vector<16xf32>
    %198 = vector.multi_reduction <add>, %195, %cst_103 [1] : vector<16x256xf32> to vector<16xf32>
    %199 = vector.shape_cast %198 : vector<16xf32> to vector<16x1xf32>
    %cst_104 = arith.constant 2.560000e+02 : f32
    %200 = vector.broadcast %cst_104 : f32 to vector<16x1xf32>
    %201 = arith.divf %199, %200 : vector<16x1xf32>
    %cst_105 = arith.constant dense<0.000000e+00> : vector<16x1xf32>
    %202 = tpu.matmul %27, %201, %cst_105 {dimension_numbers = #tpu.dot_dimension_numbers<[1], [0], [0], [1], [0, 0, 1, 1], [], []>} : vector<16x16xf32>, vector<16x1xf32>, vector<16x1xf32> -> vector<16x1xf32>
    %203 = vector.broadcast %202 : vector<16x1xf32> to vector<16x256xf32>
    %204 = arith.subf %195, %203 : vector<16x256xf32>
    %205 = arith.mulf %204, %204 : vector<16x256xf32>
    %cst_106 = arith.constant dense<0.000000e+00> : vector<16xf32>
    %206 = vector.multi_reduction <add>, %205, %cst_106 [1] : vector<16x256xf32> to vector<16xf32>
    %207 = vector.shape_cast %206 : vector<16xf32> to vector<16x1xf32>
    %cst_107 = arith.constant 2.560000e+02 : f32
    %208 = vector.broadcast %cst_107 : f32 to vector<16x1xf32>
    %209 = arith.divf %207, %208 : vector<16x1xf32>
    %cst_108 = arith.constant dense<0.000000e+00> : vector<16x1xf32>
    %210 = tpu.matmul %27, %209, %cst_108 {dimension_numbers = #tpu.dot_dimension_numbers<[1], [0], [0], [1], [0, 0, 1, 1], [], []>} : vector<16x16xf32>, vector<16x1xf32>, vector<16x1xf32> -> vector<16x1xf32>
    %cst_109 = arith.constant 9.99999974E-6 : f32
    %211 = vector.broadcast %cst_109 : f32 to vector<16x1xf32>
    %212 = arith.addf %210, %211 : vector<16x1xf32>
    %213 = math.rsqrt %212 : vector<16x1xf32>
    %214 = vector.broadcast %213 : vector<16x1xf32> to vector<16x256xf32>
    %215 = arith.mulf %204, %214 : vector<16x256xf32>
    %216 = vector.broadcast %196 : vector<16x1xf32> to vector<16x256xf32>
    %217 = arith.mulf %215, %216 : vector<16x256xf32>
    %218 = vector.broadcast %197 : vector<16x1xf32> to vector<16x256xf32>
    %219 = arith.addf %217, %218 : vector<16x256xf32>
    %220 = arith.negf %219 : vector<16x256xf32>
    %221 = math.exp %220 : vector<16x256xf32>
    %cst_110 = arith.constant 1.000000e+00 : f32
    %222 = vector.broadcast %cst_110 : f32 to vector<16x256xf32>
    %223 = arith.addf %222, %221 : vector<16x256xf32>
    %224 = arith.divf %222, %223 : vector<16x256xf32>
    %225 = arith.mulf %219, %224 : vector<16x256xf32>
    %c0_111 = arith.constant 0 : index
    %c0_112 = arith.constant 0 : index
    %226 = vector.load %arg13[%c0_111, %c0_112] : memref<16x4xf32, #tpu.memory_space<vmem>>, vector<16x4xf32>
    %cst_113 = arith.constant dense<0.000000e+00> : vector<16x256xf32>
    %227 = tpu.matmul %226, %29, %cst_113 {dimension_numbers = #tpu.dot_dimension_numbers<[1], [0], [0], [1], [0, 0, 1, 1], [], []>} : vector<16x4xf32>, vector<4x256xf32>, vector<16x256xf32> -> vector<16x256xf32>
    %c0_114 = arith.constant 0 : index
    %c0_115 = arith.constant 0 : index
    %228 = vector.load %arg14[%c0_114, %c0_115] : memref<16x1xf32, #tpu.memory_space<vmem>>, vector<16x1xf32>
    %229 = vector.broadcast %228 : vector<16x1xf32> to vector<16x256xf32>
    %230 = arith.addf %227, %229 : vector<16x256xf32>
    %231 = arith.addf %225, %230 : vector<16x256xf32>
    %c0_116 = arith.constant 0 : index
    %c0_117 = arith.constant 0 : index
    %c0_118 = arith.constant 0 : index
    %232 = vector.load %arg16[%c0_116, %c0_117, %c0_118] : memref<1x16x256xf32, #tpu.memory_space<vmem>>, vector<1x16x256xf32>
    %233 = vector.shape_cast %232 : vector<1x16x256xf32> to vector<16x256xf32>
    %234 = vector.shape_cast %231 : vector<16x256xf32> to vector<1x16x256xf32>
    tpu.vector_store %arg16[%c0_116, %c0_117, %c0_118], %234 {strides = array<i32>} : memref<1x16x256xf32, #tpu.memory_space<vmem>>, vector<1x16x256xf32>,
    return
  }
  func.func @transform_0(%arg0: i32) -> (i32, i32, i32) {
    %c0_i32 = arith.constant 0 : i32
    %c0_i32_0 = arith.constant 0 : i32
    %c0_i32_1 = arith.constant 0 : i32
    return %arg0, %c0_i32, %c0_i32_0 : i32, i32, i32
  }
  func.func @transform_1(%arg0: i32) -> (i32, i32, i32) {
    %c0_i32 = arith.constant 0 : i32
    %c0_i32_0 = arith.constant 0 : i32
    %c0_i32_1 = arith.constant 0 : i32
    return %arg0, %c0_i32, %c0_i32_0 : i32, i32, i32
  }
  func.func @transform_2(%arg0: i32) -> (i32, i32, i32) {
    %c0_i32 = arith.constant 0 : i32
    %c0_i32_0 = arith.constant 0 : i32
    %c0_i32_1 = arith.constant 0 : i32
    %c0_i32_2 = arith.constant 0 : i32
    return %c0_i32, %c0_i32_0, %c0_i32_1 : i32, i32, i32
  }
  func.func @transform_3(%arg0: i32) -> (i32, i32) {
    %c0_i32 = arith.constant 0 : i32
    %c0_i32_0 = arith.constant 0 : i32
    %c0_i32_1 = arith.constant 0 : i32
    return %c0_i32, %c0_i32_0 : i32, i32
  }
  func.func @transform_4(%arg0: i32) -> (i32, i32) {
    %c0_i32 = arith.constant 0 : i32
    %c0_i32_0 = arith.constant 0 : i32
    %c0_i32_1 = arith.constant 0 : i32
    return %c0_i32, %c0_i32_0 : i32, i32
  }
  func.func @transform_5(%arg0: i32) -> (i32, i32) {
    %c0_i32 = arith.constant 0 : i32
    %c0_i32_0 = arith.constant 0 : i32
    %c0_i32_1 = arith.constant 0 : i32
    return %c0_i32, %c0_i32_0 : i32, i32
  }
  func.func @transform_6(%arg0: i32) -> (i32, i32, i32) {
    %c0_i32 = arith.constant 0 : i32
    %c0_i32_0 = arith.constant 0 : i32
    %c0_i32_1 = arith.constant 0 : i32
    %c0_i32_2 = arith.constant 0 : i32
    return %c0_i32, %c0_i32_0, %c0_i32_1 : i32, i32, i32
  }
  func.func @transform_7(%arg0: i32) -> (i32, i32) {
    %c0_i32 = arith.constant 0 : i32
    %c0_i32_0 = arith.constant 0 : i32
    %c0_i32_1 = arith.constant 0 : i32
    return %c0_i32, %c0_i32_0 : i32, i32
  }
  func.func @transform_8(%arg0: i32) -> (i32, i32) {
    %c0_i32 = arith.constant 0 : i32
    %c0_i32_0 = arith.constant 0 : i32
    %c0_i32_1 = arith.constant 0 : i32
    return %c0_i32, %c0_i32_0 : i32, i32
  }
  func.func @transform_9(%arg0: i32) -> (i32, i32) {
    %c0_i32 = arith.constant 0 : i32
    %c0_i32_0 = arith.constant 0 : i32
    %c0_i32_1 = arith.constant 0 : i32
    return %c0_i32, %c0_i32_0 : i32, i32
  }
  func.func @transform_10(%arg0: i32) -> (i32, i32) {
    %c0_i32 = arith.constant 0 : i32
    %c0_i32_0 = arith.constant 0 : i32
    %c0_i32_1 = arith.constant 0 : i32
    return %c0_i32, %c0_i32_0 : i32, i32
  }
  func.func @transform_11(%arg0: i32) -> (i32, i32) {
    %c0_i32 = arith.constant 0 : i32
    %c0_i32_0 = arith.constant 0 : i32
    %c0_i32_1 = arith.constant 0 : i32
    return %c0_i32, %c0_i32_0 : i32, i32
  }
  func.func @transform_12(%arg0: i32) -> (i32, i32) {
    %c0_i32 = arith.constant 0 : i32
    %c0_i32_0 = arith.constant 0 : i32
    %c0_i32_1 = arith.constant 0 : i32
    return %c0_i32, %c0_i32_0 : i32, i32
  }
  func.func @transform_13(%arg0: i32) -> (i32, i32) {
    %c0_i32 = arith.constant 0 : i32
    %c0_i32_0 = arith.constant 0 : i32
    %c0_i32_1 = arith.constant 0 : i32
    return %c0_i32, %c0_i32_0 : i32, i32
  }
  func.func @transform_14(%arg0: i32) -> (i32, i32) {
    %c0_i32 = arith.constant 0 : i32
    %c0_i32_0 = arith.constant 0 : i32
    %c0_i32_1 = arith.constant 0 : i32
    return %c0_i32, %c0_i32_0 : i32, i32
  }
  func.func @transform_15(%arg0: i32) -> (i32, i32, i32) {
    %c0_i32 = arith.constant 0 : i32
    %c0_i32_0 = arith.constant 0 : i32
    %c0_i32_1 = arith.constant 0 : i32
    return %arg0, %c0_i32, %c0_i32_0 : i32, i32, i32
  }
}

</mosaic_0001>

<bundles_post_ra>
// kernel: tpu_custom_call.1
= control target key start
LH: loop header
LB: loop body
LE: loop exit
PB: predicated region body
PF: predicated region fallthrough
CT: control target
= control target key end

     0   :  { %s3914_s0 = inlined_call_operand.vmem [shape: f32[2,4,256], index: 0, kind: input, shape index: {}]   ;;  %s3915_s1 = inlined_call_operand.vmem [shape: f32[2,32,1], index: 1, kind: input, shape index: {}]   ;;  %s3916_s2 = inlined_call_operand.vmem [shape: bf16[9,16,4], index: 2, kind: input, shape index: {}]   ;;  %s3917_s3 = inlined_call_operand.vmem [shape: f32[16,1], index: 3, kind: input, shape index: {}]   ;;  %s3918_s4 = inlined_call_operand.vmem [shape: f32[16,1], index: 4, kind: input, shape index: {}]   ;;  %s3919_s5 = inlined_call_operand.vmem [shape: f32[16,1], index: 5, kind: input, shape index: {}]   ;;  %s3920_s6 = inlined_call_operand.vmem [shape: bf16[9,16,16], index: 6, kind: input, shape index: {}]   ;;  %s3921_s7 = inlined_call_operand.vmem [shape: f32[16,1], index: 7, kind: input, shape index: {}]   ;;  %s3922_s8 = inlined_call_operand.vmem [shape: f32[16,1], index: 8, kind: input, shape index: {}]   ;;  %s3923_s9 = inlined_call_operand.vmem [shape: f32[16,1], index: 9, kind: input, shape index: {}]   ;;  %s3924_s10 = inlined_call_operand.vmem [shape: f32[16,32], index: 10, kind: input, shape index: {}]   ;;  %s3925_s11 = inlined_call_operand.vmem [shape: f32[16,1], index: 11, kind: input, shape index: {}]   ;;  %s3926_s12 = inlined_call_operand.vmem [shape: f32[16,4], index: 12, kind: input, shape index: {}]   ;;  %s3927_s13 = inlined_call_operand.vmem [shape: f32[16,1], index: 13, kind: input, shape index: {}]   ;;  %s3928_s14 = inlined_call_operand.vmem [shape: f32[16,16], index: 14, kind: input, shape index: {}]   ;;  %s3929_s15 = inlined_call_operand.hbm [shape: f32[2,16,256], index: 15, kind: output, shape index: {}]  }
   0x1   :  { %3950 = sst [smem:[#allocation7_spill]] %s3914_s0 }
   0x2   :  { %3951 = sst [smem:[#allocation8_spill]] %s3915_s1 }
   0x3   :  { %3952 = sst [smem:[#allocation9_spill]] %s3916_s2 }
   0x4   :  { %20 = vsyncpa [#allocation3], 0 }
   0x5   :  { %22 = vsyncpa [#allocation3 + $0x1], 0  ;;  %s3360_s18 = smov 0   ;;  %s3362_s19 = smov 0  }
   0x6   :  { %s3364_s20 = smov 0   ;;  %s3366_s21 = smov 0  }
   0x7 LB: > { %3953 = sst [smem:[#allocation5_spill]] %s3256_s20  ;;  %s3381_s22 = sadd.s32 4294967295, %s3260_s21   ;;  %s3260_s21 = sphi %s3366_s21, %s3974_s21   ;;  %s3256_s20 = sphi %s3364_s20, %s3971_s20   ;;  %s3252_s19 = sphi %s3362_s19, %s3973_s19   ;;  %s3248_s18 = sphi %s3360_s18, %s3972_s18  }
   0x8   : > { %s2811_s23 = sadd.s32 4294967294, %s3260_s21   ;;  %s3385_s24 = sadd.s32 1, %s3260_s21  }
   0x9   : > { %s360_s25 = sadd.s32 1, %s3256_s20  ;;  %s357_s26 = ssub.s32 %s3260_s21, %s3385_s24 }
   0xa   : > { %p370_p0 = scmp.ne.s32.totalorder %s3256_s20, %s3252_s19  ;;  %p358_p1 = scmp.eq.s32.totalorder %s357_s26, 0 }
   0xb   : > { %p371_p2 = scmp.eq.s32.totalorder %s3381_s22, 1  ;;  %p376_p3 = scmp.ne.s32.totalorder %s3252_s19, %s3248_s18 }
   0xc   : > { %p377_p4 = scmp.eq.s32.totalorder %s2811_s23, 1  ;;  %p2814_p7 = scmp.ge.s32.totalorder %s3260_s21, 1 }
   0xd   : > { %s3396_s27 = scalar_select %p358_p1, %s3256_s20, %s360_s25  }
   0xe   : > { %p3398_p5 = por %p371_p2, %p370_p0  ;;  %p3402_p6 = por %p377_p4, %p376_p3 }
   0xf   : > { %3954 = sst [smem:[#allocation6_spill]] %s3396_s27  ;;  %p450_p8 = scmp.lt.s32.totalorder %s3260_s21, 3 }
  0x11   : > { %p451_p9 = pnand %p2814_p7, %p450_p8 }
  0x12   : > { %p503_p10 = scmp.lt.s32.totalorder (!%p451_p9), %s3381_s22, 1  ;;  %v514_v0 = vlaneseq (!%p451_p9)  ;;  %s3957_s0 = sld [smem:[#allocation7_spill]] (!%p451_p9)  ;;  %v3262_v7 = vmov (!%p451_p9), 0.0   ;;  %v3267_v18 = vmov (!%p451_p9), 0   ;;  %vm573_vm4 = vcmask (!%p451_p9), 138240  }
  0x13   : > { %454 = sbr.rel (%p451_p9) target bundleno = 3292 (0xcdc), region = 80  ;;  %s3941_s26 = smov (!%p451_p9), 17   ;;  %650 = vmatprep.mubr.bf16.mxu0 (!%p451_p9), %v3267_v18  ;;  %3136 = vset.pattern.permute.xlu0 (!%p451_p9), %v3267_v18  ;;  %vm724_vm5 = vcmask (!%p451_p9), 15360   ;;  %vm814_vm6 = vcmask (!%p451_p9), 130048   ;;  %vm975_vm7 = vcmask (!%p451_p9), 146432   ;;  %vm604_vm8 = vcmask (!%p451_p9), 1039360  }
  0x14   : > { %v515_v1 = vand.u32 (!%p451_p9), 127, %v514_v0  ;;  %s3930_s17 = smov (!%p451_p9), 16   ;;  %s3266_s23 = smov (!%p451_p9), 18   ;;  %3137 = vset.pattern.permute.xlu1 (!%p451_p9), %v3267_v18  ;;  %vm611_vm9 = vcmask (!%p451_p9), 1041408   ;;  %vm1063_vm10 = vcmask (!%p451_p9), 261120   ;;  %vm607_vm11 = vcmask (!%p451_p9), 31744  }
  0x15   : > { %s3958_s2 = sld [smem:[#allocation9_spill]] (!%p451_p9)  ;;  %vm749_vm12 = vcmask (!%p451_p9), 1031168   ;;  %vm1224_vm13 = vcmask (!%p451_p9), 277504   ;;  %vm839_vm14 = vcmask (!%p451_p9), 916480   ;;  %vm912_vm15 = vcmask (!%p451_p9), 908288   ;;  %s3959_s1 = sld [smem:[#allocation8_spill]] (!%p451_p9) }
  0x16   : > { %v521_v2 = vand.u32 (!%p451_p9), 15, %v515_v1  ;;  %v516_v3 = vadd.s32 (!%p451_p9), 128, %v515_v1  ;;  %s3963_s20 = smov (!%p451_p9), 112  }
  0x18   : > { %vm549_vm0 = vcmp.le.s32.totalorder (!%p451_p9), %v521_v2, 14  ;;  %v528_v5 = vand.u32 (!%p451_p9), 15, %v516_v3  ;;  %vm541_vm1 = vcmp.ge.s32.totalorder (!%p451_p9), %v521_v2, 1 }
  0x19   : > { %v2822_v8 = vsel (!%p451_p9), %vm549_vm0, 1.0, %v3262_v7  ;;  %v2820_v13 = vsel (!%p451_p9), %vm541_vm1, 1.0, %v3262_v7  ;;  %vm1000_vm0 = vcmask (!%p451_p9), 900096   ;;  %vm1088_vm1 = vcmask (!%p451_p9), 785408  }
  0x1a   : > { %s3410_s30 = scalar_select %p503_p10, %s3381_s22, 1  ;;  %v555_v10 = vpack.c.bf16 %v2822_v8, %v2822_v8  ;;  %vm550_vm2 = vcmp.le.s32.totalorder %v528_v5, 14  ;;  %vm542_vm3 = vcmp.ge.s32.totalorder %v528_v5, 1  ;;  %v3429_v16 = vpack.c.bf16 %v2820_v13, %v2820_v13 }
  0x1b   : > { %v2823_v12 = vsel %vm550_vm2, 1.0, %v3262_v7  ;;  %v2821_v14 = vsel %vm542_vm3, 1.0, %v3262_v7  ;;  %v3139_v49 = vld [vmem:[%s3958_s2 + $0x8] sm:$0xff]   ;;  %v3140_v63 = vld [vmem:[%s3958_s2] sm:$0xff]   ;;  %vm1161_vm2 = vcmask 777216   ;;  %vm1249_vm3 = vcmask 769024  }
  0x1c   : > { %s2928_s16 = sshll.u32 %s3410_s30, 3  ;;  %v556_v15 = vpack.c.bf16 %v2823_v12, %v2823_v12  ;;  %v3431_v17 = vpack.c.bf16 %v2821_v14, %v2821_v14  ;;  %v3141_v14 = vld [vmem:[%s3958_s2 + $0x10] sm:$0xff]   ;;  %s2929_s27 = sshll.u32 %s3410_s30, 5 }
  0x1d   : > { %s3416_s25 = scalar_lea.vmem %s3957_s0, %s2928_s16  ;;  %s3264_s16 = smov 2  }
  0x1e   : > { %v559_v4 = vld [vmem:[%s3416_s25] sm:$0xff]  ;;  %720 = vrot.lane.b32.xlu1 %v555_v10, %s3264_s16  ;;  %s3962_s0 = smov 126   ;;  %s3967_s30 = smov 95  }
  0x1f   : > { %v563_v6 = vpack.c.bf16 %v559_v4, %v559_v4  ;;  %v3420_v9 = vcombine.high %v559_v4, %v559_v4 }
  0x21   : > { %569 = vrot.lane.b32.xlu0 %v563_v6, %s3941_s26  ;;  %v564_v11 = vpack.c.bf16 %v3420_v9, %v3420_v9 }
  0x22   : > { %722 = vrot.lane.b32.xlu1 %v556_v15, %s3264_s16  ;;  %s3931_s16 = smov 127  }
  0x25   : > { %571 = vrot.lane.b32.xlu0 %v564_v11, %s3941_s26  ;;  %s3948_s26 = smov 94  }
  0x26   : > { %812 = vrot.lane.b32.xlu1 %v3431_v17, %s3930_s17 }
  0x29   : > { %810 = vrot.lane.b32.xlu0 %v3429_v16, %s3930_s17  ;;  %s3933_s17 = smov 126  }
  0x2a   : > { %973 = vrot.lane.b32.xlu1 %v556_v15, %s3266_s23 }
  0x2d   : > { %971 = vrot.lane.b32.xlu0 %v555_v10, %s3266_s23  ;;  %s3269_s23 = smov 32  }
  0x90   : > { %v3443_v21 = vpop.permute.xlu1 %720 }
  0x93   : > { %v570_v19 = vpop.permute.xlu0 %569 }
  0x94   : > { %v3441_v20 = vsel %vm573_vm4, 0, %v570_v19  ;;  %v3453_v25 = vpop.permute.xlu1 %722 }
  0x95   : > { %598 = vrot.lane.b32.xlu0 %v3441_v20, %s3931_s16  ;;  %v3461_v26 = vsel %vm724_vm5, %v3443_v21, %v3453_v25  ;;  %v729_v27 = vmul.bf16 %v3443_v21, %v3441_v20  ;;  %v584_v50 = vmul.bf16 %v3441_v20, %v3429_v16 }
  0x97   : > { %v572_v22 = vpop.permute.xlu0 %571  ;;  %v670_v55 = vsel %vm611_vm9, %v584_v50, 0 }
  0x98   : > { %v3448_v23 = vsel %vm573_vm4, %v570_v19, %v572_v22  ;;  %v3451_v24 = vsel %vm573_vm4, %v572_v22, 0  ;;  %v3475_v31 = vpop.permute.xlu1 %812  ;;  %v565_v19 = vld [vmem:[%s3917_s3] sm:$0xff] }
  0x99   : > { %602 = vrot.lane.b32.xlu0 %v3451_v24, %s3931_s16  ;;  %600 = vrot.lane.b32.xlu1 %v3448_v23, %s3931_s16  ;;  %v730_v28 = vmul.bf16 %v3461_v26, %v3448_v23  ;;  %v731_v29 = vmul.bf16 %v3453_v25, %v3451_v24  ;;  %s3937_s16 = smov 112   ;;  %v821_v34 = vmul.bf16 %v3475_v31, %v3451_v24 }
  0x9a   : > { %v585_v48 = vmul.bf16 %v3448_v23, %v3431_v17 }
  0x9b   : > { %v3473_v30 = vpop.permute.xlu0 %810 }
  0x9c   : > { %v819_v32 = vmul.bf16 %v3473_v30, %v3441_v20  ;;  %v3483_v33 = vsel %vm814_vm6, %v3473_v30, %v3475_v31  ;;  %v3494_v37 = vpop.permute.xlu1 %973 }
  0x9d   : > { %1061 = vrot.lane.b32.xlu0 %v3431_v17, %s3269_s23  ;;  %1059 = vrot.lane.b32.xlu1 %v3429_v16, %s3269_s23  ;;  %s3271_s23 = smov 34   ;;  %v820_v35 = vmul.bf16 %v3483_v33, %v3448_v23  ;;  %v982_v40 = vmul.bf16 %v3494_v37, %v3451_v24 }
  0x9f   : > { %v3492_v36 = vpop.permute.xlu0 %971 }
  0xa0   : > { %v980_v38 = vmul.bf16 %v3492_v36, %v3441_v20  ;;  %v3504_v39 = vsel %vm975_vm7, %v3492_v36, %v3494_v37 }
  0xa1   : > { %743 = vrot.lane.b32.xlu1 %v729_v27, %s3933_s17  ;;  %745 = vrot.lane.b32.xlu0 %v730_v28, %s3933_s17  ;;  %v981_v41 = vmul.bf16 %v3504_v39, %v3448_v23 }
  0xa5   : > { %747 = vrot.lane.b32.xlu1 %v731_v29, %s3933_s17  ;;  %1220 = vrot.lane.b32.xlu0 %v555_v10, %s3271_s23  ;;  %s3935_s17 = smov 111   ;;  %v3142_v29 = vld [vmem:[%s3958_s2 + $0x18] sm:$0xff]  }
  0xa9   : > { %1222 = vrot.lane.b32.xlu1 %v556_v15, %s3271_s23  ;;  %833 = vrot.lane.b32.xlu0 %v819_v32, %s3937_s16  ;;  %s3939_s23 = smov 110  }
  0xad   : > { %837 = vrot.lane.b32.xlu0 %v821_v34, %s3937_s16  ;;  %835 = vrot.lane.b32.xlu1 %v820_v35, %s3937_s16  ;;  %s3943_s16 = smov 95  }
  0xb1   : > { %908 = vrot.lane.b32.xlu0 %v3448_v23, %s3935_s17  ;;  %906 = vrot.lane.b32.xlu1 %v3441_v20, %s3935_s17 }
  0xb5   : > { %910 = vrot.lane.b32.xlu1 %v3451_v24, %s3935_s17  ;;  %994 = vrot.lane.b32.xlu0 %v980_v38, %s3939_s23  ;;  %s3945_s17 = smov 96  }
  0xb9   : > { %998 = vrot.lane.b32.xlu0 %v982_v40, %s3939_s23  ;;  %996 = vrot.lane.b32.xlu1 %v981_v41, %s3939_s23  ;;  %v3143_v41 = vld [vmem:[%s3958_s2 + $0x20] sm:$0xff]   ;;  %s3960_s23 = smov 17  }
 0x107   : > { %v599_v42 = vpop.permute.xlu0 %598 }
 0x10b   : > { %v601_v43 = vpop.permute.xlu1 %600  ;;  %v603_v44 = vpop.permute.xlu0 %602 }
 0x10c   : > { %v606_v45 = vsel %vm604_vm8, %v601_v43, %v603_v44  ;;  %v605_v46 = vsel %vm604_vm8, %v599_v42, %v601_v43  ;;  %v3144_v44 = vld [vmem:[%s3958_s2 + $0x28] sm:$0xff]  }
 0x10d   : > { %2827 = vmatprep.subr.msk.bf16.mxu0 %vm611_vm9, %v606_v45  ;;  %v613_v47 = vsel %vm611_vm9, %v605_v46, 0 }
 0x10e   : > { %619 = vmatpush1.bf16.msra.mxu0 %v613_v47 }
 0x10f   : > { %v3526_v51 = vpop.permute.xlu1 %1059  ;;  %2830 = vmatprep.subr.msk.bf16.mxu0 %vm611_vm9, %v585_v48  ;;  %v3529_v52 = vpop.permute.xlu0 %1061 }
 0x110   : > { %v1068_v53 = vmul.bf16 %v3526_v51, %v3441_v20  ;;  %v3536_v54 = vsel %vm1063_vm10, %v3526_v51, %v3529_v52  ;;  %v1070_v59 = vmul.bf16 %v3529_v52, %v3451_v24 }
 0x111   : > { %2828 = vmatmul.mubr.msk.bf16.vlgmr.msra.gmra.mrb[0].mxu0 %vm607_vm11, %v3139_v49  ;;  %v1069_v56 = vmul.bf16 %v3536_v54, %v3448_v23 }
 0x112   : > { %1082 = vrot.lane.b32.xlu1 %v1068_v53, %s3945_s17  ;;  %676 = vmatpush1.bf16.msra.mxu0 %v670_v55  ;;  %v3145_v55 = vld [vmem:[%s3958_s2 + $0x30] sm:$0xff]  }
 0x113   : > { %v744_v57 = vpop.permute.xlu1 %743  ;;  %1084 = vrot.lane.b32.xlu0 %v1069_v56, %s3945_s17  ;;  %v746_v58 = vpop.permute.xlu0 %745  ;;  %707 = vmatprep.mubr.bf16.mxu0 %v3267_v18 }
 0x114   : > { %v750_v0 = vsel %vm749_vm12, %v744_v57, %v746_v58 }
 0x115   : > { %v756_v5 = vsel %vm611_vm9, %v750_v0, 0 }
 0x116   : > { %1086 = vrot.lane.b32.xlu1 %v1070_v59, %s3945_s17  ;;  %s3965_s17 = smov 110  }
 0x117   : > { %v748_v60 = vpop.permute.xlu1 %747  ;;  %1155 = vrot.lane.b32.xlu0 %v3441_v20, %s3943_s16  ;;  %v3550_v61 = vpop.permute.xlu0 %1220 }
 0x118   : > { %v751_v62 = vsel %vm749_vm12, %v746_v58, %v748_v60  ;;  %v1229_v3 = vmul.bf16 %v3550_v61, %v3441_v20  ;;  %v566_v20 = vld [vmem:[%s3917_s3 + $0x8] sm:$0xff] }
 0x119   : > { %2835 = vmatprep.subr.msk.bf16.mxu0 %vm611_vm9, %v751_v62 }
 0x11a   : > { %1157 = vrot.lane.b32.xlu1 %v3448_v23, %s3943_s16 }
 0x11b   : > { %v3560_v1 = vpop.permute.xlu1 %1222  ;;  %1159 = vrot.lane.b32.xlu0 %v3451_v24, %s3943_s16  ;;  %v834_v2 = vpop.permute.xlu0 %833  ;;  %s3966_s16 = smov 96  }
 0x11c   : > { %v3568_v4 = vsel %vm1224_vm13, %v3550_v61, %v3560_v1  ;;  %v1231_v11 = vmul.bf16 %v3560_v1, %v3451_v24 }
 0x11d   : > { %2831 = vmatmul.mubr.msk.bf16.vlgmr.msra.gmra.mrb[0].mxu0 %vm607_vm11, %v3140_v63  ;;  %v1230_v6 = vmul.bf16 %v3568_v4, %v3448_v23 }
 0x11e   : > { %762 = vmatpush1.bf16.msra.mxu0 %v756_v5  ;;  %1243 = vrot.lane.b32.xlu1 %v1229_v3, %s3948_s26  ;;  %v3146_v3 = vld [vmem:[%s3958_s2 + $0x38] sm:$0xff]  }
 0x11f   : > { %v836_v8 = vpop.permute.xlu1 %835  ;;  %1245 = vrot.lane.b32.xlu0 %v1230_v6, %s3948_s26  ;;  %v838_v10 = vpop.permute.xlu0 %837  ;;  %793 = vmatprep.mubr.bf16.mxu0 %v3267_v18 }
 0x120   : > { %v841_v12 = vsel %vm839_vm14, %v836_v8, %v838_v10  ;;  %v840_v15 = vsel %vm839_vm14, %v834_v2, %v836_v8  ;;  %v3147_v8 = vld [vmem:[%s3958_s2 + $0x40] sm:$0xff]   ;;  %s512_s2 = scalar_lea.vmem %s3959_s1, %s2929_s27  ;;  %s3964_s27 = smov 111  }
 0x121   : > { %2840 = vmatprep.subr.msk.bf16.mxu0 %vm611_vm9, %v841_v12  ;;  %v846_v27 = vsel %vm611_vm9, %v840_v15, 0 }
 0x122   : > { %1247 = vrot.lane.b32.xlu1 %v1231_v11, %s3948_s26  ;;  %s3968_s26 = smov 94  }
 0x123   : > { %v907_v13 = vpop.permute.xlu1 %906  ;;  %v909_v22 = vpop.permute.xlu0 %908  ;;  %1310 = vperm.xlu0 %3136, %v565_v19  }
 0x124   : > { %v913_v32 = vsel %vm912_vm15, %v907_v13, %v909_v22 }
 0x125   : > { %v919_v38 = vsel %vm611_vm9, %v913_v32, 0 }
 0x126   : > { %1315 = vperm.xlu1 %3137, %v566_v20  }
 0x127   : > { %v911_v23 = vpop.permute.xlu1 %910  ;;  %v995_v28 = vpop.permute.xlu0 %994 }
 0x128   : > { %v914_v24 = vsel %vm912_vm15, %v909_v22, %v911_v23 }
 0x129   : > { %2836 = vmatmul.mubr.msk.bf16.vlgmr.msra.gmra.mrb[0].mxu0 %vm607_vm11, %v3141_v14 }
 0x12a   : > { %852 = vmatpush1.bf16.msra.mxu0 %v846_v27  ;;  %883 = vmatprep.mubr.bf16.mxu0 %v3267_v18 }
 0x12b   : > { %2845 = vmatprep.subr.msk.bf16.mxu0 %vm611_vm9, %v914_v24  ;;  %v997_v34 = vpop.permute.xlu1 %996  ;;  %v999_v35 = vpop.permute.xlu0 %998 }
 0x12c   : > { %v1002_v40 = vsel %vm1000_vm0, %v997_v34, %v999_v35  ;;  %v1001_v42 = vsel %vm1000_vm0, %v995_v28, %v997_v34  ;;  %v3647_v28 = vld [vmem:[%s3928_s14] sm:$0xff] }
 0x12d   : > { %v1007_v43 = vsel %vm611_vm9, %v1001_v42, 0  ;;  %2957 = vmatprep.mubr.msk.f32.mxu1 %vm814_vm6, %v3647_v28 }
 0x135   : > { %2841 = vmatmul.mubr.msk.bf16.vlgmr.msra.gmra.mrb[0].mxu0 %vm607_vm11, %v3142_v29 }
 0x136   : > { %925 = vmatpush1.bf16.msra.mxu0 %v919_v38  ;;  %956 = vmatprep.mubr.bf16.mxu0 %v3267_v18 }
 0x137   : > { %2850 = vmatprep.subr.msk.bf16.mxu0 %vm611_vm9, %v1002_v40  ;;  %v3656_v40 = vld [vmem:[%s3928_s14 + $0x8] sm:$0xff] }
 0x141   : > { %2846 = vmatmul.mubr.msk.bf16.vlgmr.msra.gmra.mrb[0].mxu0 %vm607_vm11, %v3143_v41 }
 0x142   : > { %1013 = vmatpush1.bf16.msra.mxu0 %v1007_v43  ;;  %1044 = vmatprep.mubr.bf16.mxu0 %v3267_v18 }
 0x14d   : > { %2851 = vmatmul.mubr.msk.bf16.vlgmr.msra.gmra.mrb[0].mxu0 %vm607_vm11, %v3144_v44 }
 0x14e   : > { %1132 = vmatprep.mubr.bf16.mxu0 %v3267_v18 }
 0x184   : > { %v1083_v45 = vpop.permute.xlu1 %1082 }
 0x185   : > { %v1085_v46 = vpop.permute.xlu0 %1084 }
 0x186   : > { %v1089_v47 = vsel %vm1088_vm1, %v1083_v45, %v1085_v46 }
 0x187   : > { %v1095_v53 = vsel %vm611_vm9, %v1089_v47, 0 }
 0x188   : > { %v1087_v48 = vpop.permute.xlu1 %1086 }
 0x189   : > { %v1090_v49 = vsel %vm1088_vm1, %v1085_v46, %v1087_v48  ;;  %v1156_v50 = vpop.permute.xlu0 %1155 }
 0x18a   : > { %2855 = vmatprep.subr.msk.bf16.mxu0 %vm611_vm9, %v1090_v49 }
 0x18b   : > { %1101 = vmatpush1.bf16.msra.mxu0 %v1095_v53 }
 0x18c   : > { %v1158_v56 = vpop.permute.xlu1 %1157 }
 0x18d   : > { %v1162_v57 = vsel %vm1161_vm2, %v1156_v50, %v1158_v56  ;;  %v1160_v58 = vpop.permute.xlu0 %1159 }
 0x18e   : > { %v1168_v59 = vsel %vm611_vm9, %v1162_v57, 0  ;;  %v1163_v60 = vsel %vm1161_vm2, %v1158_v56, %v1160_v58  ;;  %2856 = vmatmul.mubr.msk.bf16.vlgmr.msra.gmra.mrb[0].mxu0 %vm607_vm11, %v3145_v55  ;;  %v1322_v58 = vld [vmem:[%s3918_s4] sm:$0xff] }
 0x18f   : > { %2860 = vmatprep.subr.msk.bf16.mxu0 %vm611_vm9, %v1163_v60  ;;  %1205 = vmatprep.mubr.bf16.mxu0 %v3267_v18 }
 0x190   : > { %v1244_v62 = vpop.permute.xlu1 %1243  ;;  %1174 = vmatpush1.bf16.msra.mxu0 %v1168_v59  ;;  %v1323_v59 = vld [vmem:[%s3918_s4 + $0x8] sm:$0xff] }
 0x191   : > { %v1246_v63 = vpop.permute.xlu0 %1245 }
 0x192   : > { %v1250_v5 = vsel %vm1249_vm3, %v1244_v62, %v1246_v63 }
 0x193   : > { %v1256_v6 = vsel %vm611_vm9, %v1250_v5, 0 }
 0x194   : > { %v1248_v0 = vpop.permute.xlu1 %1247 }
 0x195   : > { %v1251_v2 = vsel %vm1249_vm3, %v1246_v63, %v1248_v0  ;;  %v1592_v0 = vld [vmem:[%s512_s2] sm:$0xff] }
 0x196   : > { %2865 = vmatprep.subr.msk.bf16.mxu0 %vm611_vm9, %v1251_v2  ;;  %v1593_v2 = vld [vmem:[%s512_s2 + $0x8] sm:$0xff] }
 0x19a   : > { %2861 = vmatmul.mubr.msk.bf16.vlgmr.msra.gmra.mrb[0].mxu0 %vm607_vm11, %v3146_v3 }
 0x19b   : > { %1262 = vmatpush1.bf16.msra.mxu0 %v1256_v6  ;;  %1293 = vmatprep.mubr.bf16.mxu0 %v3267_v18  ;;  %v3000_v6 = vpack.c.bf16 %v1593_v2, %v1592_v0 }
 0x1a2   : > { %v1311_v10 = vpop.permute.xlu0 %1310 }
 0x1a5   : > { %v1316_v12 = vpop.permute.xlu1 %1315 }
 0x1a6   : > { %2866 = vmatmul.mubr.msk.bf16.vlgmr.msra.gmra.mrb[0].mxu0 %vm607_vm11, %v3147_v8  ;;  %v1594_v8 = vld [vmem:[%s512_s2 + $0x10] sm:$0xff] }
 0x1a7   : > { %2982 = vmatprep.mubr.msk.f32.mxu0 %vm814_vm6, %v3647_v28 }
 0x279   : > { %v1295_v11 = vpop.f32.mrb[0].mxu0 }
 0x27a   : > { %v1318_v13 = vadd.f32 %v1311_v10, %v1295_v11  ;;  %v1297_v14 = vpop.f32.mrb[1].mxu0 }
 0x27b   : > { %v1319_v15 = vadd.f32 %v1311_v10, %v1297_v14  ;;  %v1299_v19 = vpop.f32.mrb[2].mxu0  ;;  %v1595_v10 = vld [vmem:[%s512_s2 + $0x18] sm:$0xff]  ;;  %s3961_s2 = smov 127  }
 0x27c   : > { %v1320_v20 = vadd.f32 %v1316_v12, %v1299_v19  ;;  %v1301_v22 = vpop.f32.mrb[3].mxu0  ;;  %v3004_v11 = vpack.c.bf16 %v1595_v10, %v1594_v8 }
 0x27d   : > { %v1321_v23 = vadd.f32 %v1316_v12, %v1301_v22  ;;  %v1326_v24 = vadd.f32 %v1319_v15, %v1318_v13  ;;  %v1590_v12 = vld [vmem:[%s3924_s10] sm:$0xff] }
 0x27f   : > { %1327 = vadd.xlane.f32.xlu1 %v1326_v24  ;;  %v1329_v27 = vadd.f32 %v1321_v23, %v1320_v20 }
 0x281   : > { %1330 = vadd.xlane.f32.xlu0 %v1329_v27 }
 0x30c   : > { %v1328_v29 = vpop.xlane.xlu1 %1327 }
 0x30d   : > { %v1333_v34 = vmul.f32 0.00390625, %v1328_v29  ;;  %v1324_v29 = vld [vmem:[%s3919_s5] sm:$0xff] }
 0x30e   : > { %v1331_v32 = vpop.xlane.xlu0 %1330 }
 0x30f   : > { %v1334_v35 = vmul.f32 0.00390625, %v1331_v32  ;;  %v1596_v32 = vld [vmem:[%s3925_s11] sm:$0xff] }
 0x311   : > { %v2992_v38 = vpack.c.bf16 %v1334_v35, %v1333_v34  ;;  %v1597_v34 = vld [vmem:[%s3925_s11 + $0x8] sm:$0xff] }
 0x312   : > { %v1325_v35 = vld [vmem:[%s3919_s5 + $0x8] sm:$0xff] }
 0x313   : > { %2993 = vmatprep.subr.bf16.mxu1 %v2992_v38 }
 0x314   : > { %2995 = vmatpush3.bf16.msra.mxu1 %v2992_v38 }
 0x317   : > { %2958 = vmatmul.mubr.msk.f32.vlgmr.msra.gmra.mrb[0].mxu1 %vm814_vm6, %v3656_v40 }
 0x318   : > { %2964 = vmatprep.mubr.msk.f32.mxu1 %vm814_vm6, %v3647_v28 }
 0x3ea   : > { %v2959_v41 = vpop.f32.mrb[0].mxu1 }
 0x3eb   : > { %1424 = vperm.xlu1 %3137, %v2959_v41   ;;  %v1408_v42 = vpop.f32.mrb[1].mxu1 }
 0x3ec   : > { %1419 = vperm.xlu0 %3136, %v1408_v42  }
 0x46a   : > { %v1425_v43 = vpop.permute.xlu1 %1424 }
 0x46b   : > { %v3662_v44 = vsub.f32 %v1320_v20, %v1425_v43  ;;  %v3664_v45 = vsub.f32 %v1321_v23, %v1425_v43  ;;  %v1420_v46 = vpop.permute.xlu0 %1419 }
 0x46c   : > { %v3666_v47 = vsub.f32 %v1318_v13, %v1420_v46  ;;  %v3668_v48 = vsub.f32 %v1319_v15, %v1420_v46  ;;  %v1591_v13 = vld [vmem:[%s3924_s10 + $0x8] sm:$0xff] }
 0x46d   : > { %v1433_v49 = vmul.f32 %v3662_v44, %v3662_v44  ;;  %v1434_v50 = vmul.f32 %v3664_v45, %v3664_v45 }
 0x46e   : > { %v1431_v53 = vmul.f32 %v3666_v47, %v3666_v47  ;;  %v1432_v55 = vmul.f32 %v3668_v48, %v3668_v48 }
 0x46f   : > { %v1438_v56 = vadd.f32 %v1434_v50, %v1433_v49 }
 0x470   : > { %v1435_v57 = vadd.f32 %v1432_v55, %v1431_v53 }
 0x471   : > { %1439 = vadd.xlane.f32.xlu0 %v1438_v56 }
 0x472   : > { %1436 = vadd.xlane.f32.xlu1 %v1435_v57 }
 0x483   : > { %1536 = vperm.xlu1 %3137, %v1322_v58  }
 0x487   : > { %1541 = vperm.xlu0 %3136, %v1323_v59  }
 0x4fe   : > { %v1440_v60 = vpop.xlane.xlu0 %1439 }
 0x4ff   : > { %v1442_v62 = vmul.f32 0.00390625, %v1440_v60  ;;  %v1437_v63 = vpop.xlane.xlu1 %1436 }
 0x500   : > { %v1441_v3 = vmul.f32 0.00390625, %v1437_v63 }
 0x502   : > { %v2996_v5 = vpack.c.bf16 %v1442_v62, %v1441_v3 }
 0x503   : > { %v1537_v42 = vpop.permute.xlu1 %1536 }
 0x504   : > { %2997 = vmatprep.subr.bf16.mxu1 %v2996_v5 }
 0x505   : > { %2999 = vmatpush3.bf16.msra.mxu1 %v2996_v5 }
 0x506   : > { %3001 = vmatprep.subr.bf16.mxu1 %v3000_v6  ;;  %v1542_v43 = vpop.permute.xlu0 %1541 }
 0x508   : > { %2965 = vmatmul.mubr.msk.f32.vlgmr.msra.gmra.mrb[2].mxu1 %vm814_vm6, %v3656_v40 }
 0x509   : > { %3003 = vmatpush3.bf16.msra.mxu1 %v3000_v6  ;;  %2975 = vmatprep.mubr.msk.f32.mxu1 %vm1063_vm10, %v1590_v12 }
 0x50a   : > { %3005 = vmatprep.subr.bf16.mxu1 %v3004_v11 }
 0x50d   : > { %3007 = vmatpush3.bf16.msra.mxu1 %v3004_v11 }
 0x510   : > { %2976 = vmatmul.mubr.msk.f32.vlgmr.msra.gmra.mrb[4].mxu1 %vm1063_vm10, %v1591_v13 }
 0x511   : > { %1771 = vmatprep.mubr.bf16.mxu1 %v3267_v18 }
 0x5db   : > { %v2966_v14 = vpop.f32.mrb[2].mxu1 }
 0x5dc   : > { %v1515_v15 = vadd.f32 1e-05, %v2966_v14  ;;  %v1509_v19 = vpop.f32.mrb[3].mxu1 }
 0x5dd   : > { %v1510_v20 = vadd.f32 1e-05, %v1509_v19 }
 0x5de   : > { %3157 = vrsqrt.f32 %v1515_v15 }
 0x5df   : > { %3159 = vrsqrt.f32 %v1510_v20 }
 0x5e3   : > { %v2977_v22 = vpop.f32.mrb[4].mxu1 }
 0x5e4   : > { %v1671_v23 = vpop.f32.mrb[5].mxu1  ;;  %v1677_v41 = vadd.f32 %v2977_v22, %v1597_v34 }
 0x5e5   : > { %v1672_v38 = vadd.f32 %v1671_v23, %v1596_v32 }
 0x5e8   : > { %v3158_v24 = vpop.eup %3157 }
 0x5e9   : > { %v3160_v27 = vpop.eup %3159  ;;  %1527 = vperm.xlu1 %3137, %v3158_v24  }
 0x5ea   : > { %1522 = vperm.xlu0 %3136, %v3160_v27  }
 0x5ed   : > { %1550 = vperm.xlu1 %3137, %v1324_v29  }
 0x5ee   : > { %1555 = vperm.xlu0 %3136, %v1325_v35  }
 0x5f1   : > { %1682 = vperm.xlu1 %3137, %v1672_v38  }
 0x5f2   : > { %1687 = vperm.xlu0 %3136, %v1677_v41  }
 0x668   : > { %v1528_v46 = vpop.permute.xlu1 %1527 }
 0x669   : > { %v1532_v49 = vmul.f32 %v1528_v46, %v3662_v44  ;;  %v1533_v50 = vmul.f32 %v1528_v46, %v3664_v45  ;;  %v1523_v53 = vpop.permute.xlu0 %1522 }
 0x66a   : > { %v1530_v55 = vmul.f32 %v1523_v53, %v3666_v47  ;;  %v1531_v56 = vmul.f32 %v1523_v53, %v3668_v48 }
 0x66b   : > { %v1546_v57 = vmul.f32 %v1542_v43, %v1532_v49  ;;  %v1547_v58 = vmul.f32 %v1542_v43, %v1533_v50 }
 0x66c   : > { %v1551_v59 = vpop.permute.xlu1 %1550  ;;  %v1544_v60 = vmul.f32 %v1537_v42, %v1530_v55  ;;  %v1545_v62 = vmul.f32 %v1537_v42, %v1531_v56 }
 0x66d   : > { %v1556_v63 = vpop.permute.xlu0 %1555 }
 0x66e   : > { %v1558_v0 = vadd.f32 %v1551_v59, %v1544_v60  ;;  %v1559_v2 = vadd.f32 %v1551_v59, %v1545_v62  ;;  %v1560_v3 = vadd.f32 %v1556_v63, %v1546_v57  ;;  %v1561_v5 = vadd.f32 %v1556_v63, %v1547_v58 }
 0x670   : > { %v2871_v6 = vmul.f32 -1.442695, %v1558_v0  ;;  %v2872_v8 = vmul.f32 -1.442695, %v1559_v2  ;;  %v2873_v44 = vmul.f32 -1.442695, %v1560_v3  ;;  %v1683_v24 = vpop.permute.xlu1 %1682 }
 0x671   : > { %v2874_v10 = vmul.f32 -1.442695, %v1561_v5  ;;  %v1688_v41 = vpop.permute.xlu0 %1687 }
 0x672   : > { %3161 = vpow2.f32 %v2871_v6 }
 0x673   : > { %3163 = vpow2.f32 %v2872_v8 }
 0x674   : > { %3165 = vpow2.f32 %v2873_v44 }
 0x675   : > { %3167 = vpow2.f32 %v2874_v10 }
 0x67c   : > { %v3162_v45 = vpop.eup %3161 }
 0x67d   : > { %v3164_v47 = vpop.eup %3163  ;;  %v1574_v48 = vadd.f32 1.0, %v3162_v45 }
 0x67e   : > { %v3166_v11 = vpop.eup %3165  ;;  %v1575_v12 = vadd.f32 1.0, %v3164_v47 }
 0x67f   : > { %v3168_v13 = vpop.eup %3167  ;;  %3169 = vrcp.f32 %v1574_v48  ;;  %v1576_v14 = vadd.f32 1.0, %v3166_v11 }
 0x680   : > { %3171 = vrcp.f32 %v1575_v12  ;;  %v1577_v15 = vadd.f32 1.0, %v3168_v13  ;;  %v3150_v13 = vld [vmem:[%s3920_s6 + $0x10] sm:$0xff]  }
 0x681   : > { %3173 = vrcp.f32 %v1576_v14 }
 0x682   : > { %3175 = vrcp.f32 %v1577_v15 }
 0x689   : > { %v3170_v19 = vpop.eup %3169 }
 0x68a   : > { %v3172_v20 = vpop.eup %3171  ;;  %v1586_v22 = vmul.f32 %v3170_v19, %v1558_v0 }
 0x68b   : > { %v3174_v23 = vpop.eup %3173  ;;  %v1587_v27 = vmul.f32 %v3172_v20, %v1559_v2 }
 0x68c   : > { %v3176_v29 = vpop.eup %3175  ;;  %v1690_v32 = vadd.f32 %v1683_v24, %v1586_v22  ;;  %v1588_v34 = vmul.f32 %v3174_v23, %v1560_v3  ;;  %v3151_v23 = vld [vmem:[%s3920_s6 + $0x18] sm:$0xff]  }
 0x68d   : > { %v1691_v35 = vadd.f32 %v1683_v24, %v1587_v27  ;;  %v1589_v38 = vmul.f32 %v3176_v29, %v1561_v5  ;;  %v3148_v5 = vld [vmem:[%s3920_s6 + $0x8] sm:$0xff]  }
 0x68e   : > { %v1692_v42 = vadd.f32 %v1688_v41, %v1588_v34 }
 0x68f   : > { %v1693_v43 = vadd.f32 %v1688_v41, %v1589_v38 }
 0x690   : > { %v1694_v46 = vpack.c.bf16 %v1692_v42, %v1690_v32 }
 0x691   : > { %v1695_v49 = vpack.c.bf16 %v1693_v43, %v1691_v35  ;;  %v3152_v35 = vld [vmem:[%s3920_s6 + $0x20] sm:$0xff]  }
 0x692   : > { %1700 = vrot.lane.b32.xlu1 %v1694_v46, %s3960_s23 }
 0x693   : > { %1702 = vrot.lane.b32.xlu0 %v1695_v49, %s3960_s23  ;;  %v3153_v49 = vld [vmem:[%s3920_s6 + $0x28] sm:$0xff]   ;;  %s3278_s23 = smov [#allocation2]  }
 0x704   : > { %v1701_v50 = vpop.permute.xlu1 %1700 }
 0x705   : > { %v1703_v53 = vpop.permute.xlu0 %1702  ;;  %v1707_v58 = vsel %vm573_vm4, 0, %v1701_v50 }
 0x706   : > { %v1710_v55 = vsel %vm573_vm4, %v1703_v53, 0  ;;  %v1704_v56 = vsel %vm573_vm4, %v1701_v50, %v1703_v53  ;;  %v1833_v60 = vmul.bf16 %v1707_v58, %v3443_v21  ;;  %v2123_v0 = vmul.bf16 %v1707_v58, %v3526_v51  ;;  %v1696_v51 = vld [vmem:[%s3921_s7] sm:$0xff] }
 0x707   : > { %1730 = vrot.lane.b32.xlu0 %v1710_v55, %s3961_s2  ;;  %1728 = vrot.lane.b32.xlu1 %v1704_v56, %s3961_s2  ;;  %v1834_v57 = vmul.bf16 %v1704_v56, %v3461_v26  ;;  %v1835_v59 = vmul.bf16 %v1710_v55, %v3453_v25  ;;  %v1908_v62 = vmul.bf16 %v1704_v56, %v3483_v33  ;;  %vm2633_vm4 = vcmask 1043456  }
 0x708   : > { %v1909_v63 = vmul.bf16 %v1710_v55, %v3475_v31  ;;  %v1907_v26 = vmul.bf16 %v1707_v58, %v3473_v30  ;;  %v2050_v21 = vmul.bf16 %v1704_v56, %v3504_v39  ;;  %v2051_v25 = vmul.bf16 %v1710_v55, %v3494_v37 }
 0x709   : > { %v2049_v31 = vmul.bf16 %v1707_v58, %v3492_v36  ;;  %v2124_v30 = vmul.bf16 %v1704_v56, %v3536_v54  ;;  %v2125_v33 = vmul.bf16 %v1710_v55, %v3529_v52  ;;  %v2266_v36 = vmul.bf16 %v1704_v56, %v3568_v4  ;;  %v1697_v52 = vld [vmem:[%s3921_s7 + $0x8] sm:$0xff] }
 0x70a   : > { %v2267_v37 = vmul.bf16 %v1710_v55, %v3560_v1  ;;  %v2265_v39 = vmul.bf16 %v1707_v58, %v3550_v61  ;;  %v1713_v3 = vmul.bf16 %v1704_v56, %v3431_v17  ;;  %v1712_v44 = vmul.bf16 %v1707_v58, %v3429_v16  ;;  %v3149_v17 = vld [vmem:[%s3920_s6] sm:$0xff]  }
 0x70b   : > { %1726 = vrot.lane.b32.xlu1 %v1707_v58, %s3961_s2  ;;  %1849 = vrot.lane.b32.xlu0 %v1834_v57, %s3962_s0  ;;  %s500_s2 = sand.u32 1, %s3252_s19  }
 0x70f   : > { %1851 = vrot.lane.b32.xlu1 %v1835_v59, %s3962_s0  ;;  %1847 = vrot.lane.b32.xlu0 %v1833_v60, %s3962_s0  ;;  %s2815_s0 = sshll.u32 %s500_s2, 5 }
 0x713   : > { %1923 = vrot.lane.b32.xlu1 %v1908_v62, %s3963_s20  ;;  %1925 = vrot.lane.b32.xlu0 %v1909_v63, %s3963_s20 }
 0x717   : > { %1921 = vrot.lane.b32.xlu1 %v1907_v26, %s3963_s20  ;;  %1991 = vrot.lane.b32.xlu0 %v1704_v56, %s3964_s27  ;;  %v3155_v26 = vld [vmem:[%s3920_s6 + $0x38] sm:$0xff]  }
 0x71b   : > { %1993 = vrot.lane.b32.xlu1 %v1710_v55, %s3964_s27  ;;  %1989 = vrot.lane.b32.xlu0 %v1707_v58, %s3964_s27  ;;  %s2930_s27 = sshll.u32 %s3381_s22, 9  ;;  %s3872_s22 = scalar_lea.sflag [#allocation3], %s500_s2 }
 0x71f   : > { %2065 = vrot.lane.b32.xlu1 %v2050_v21, %s3965_s17  ;;  %2067 = vrot.lane.b32.xlu0 %v2051_v25, %s3965_s17 }
 0x723   : > { %2063 = vrot.lane.b32.xlu1 %v2049_v31, %s3965_s17  ;;  %2139 = vrot.lane.b32.xlu0 %v2124_v30, %s3966_s16  ;;  %v3156_v31 = vld [vmem:[%s3920_s6 + $0x40] sm:$0xff]  }
 0x727   : > { %2141 = vrot.lane.b32.xlu1 %v2125_v33, %s3966_s16  ;;  %2137 = vrot.lane.b32.xlu0 %v2123_v0, %s3966_s16 }
 0x72b   : > { %2207 = vrot.lane.b32.xlu1 %v1704_v56, %s3967_s30  ;;  %2209 = vrot.lane.b32.xlu0 %v1710_v55, %s3967_s30 }
 0x72f   : > { %2205 = vrot.lane.b32.xlu1 %v1707_v58, %s3967_s30  ;;  %2281 = vrot.lane.b32.xlu0 %v2266_v36, %s3968_s26  ;;  %v3154_v58 = vld [vmem:[%s3920_s6 + $0x30] sm:$0xff]   ;;  %s3870_s30 = scalar_lea.hbm %s3929_s15, %s2930_s27 }
 0x733   : > { %2283 = vrot.lane.b32.xlu1 %v2267_v37, %s3968_s26  ;;  %2279 = vrot.lane.b32.xlu0 %v2265_v39, %s3968_s26 }
 0x737   : > { %2341 = vperm.xlu1 %3137, %v1696_v51   ;;  %2346 = vperm.xlu0 %3136, %v1697_v52  }
 0x779   : > { %v1731_v54 = vpop.permute.xlu0 %1730  ;;  %v1729_v4 = vpop.permute.xlu1 %1728 }
 0x77a   : > { %v1733_v1 = vsel %vm604_vm8, %v1729_v4, %v1731_v54 }
 0x77b   : > { %1739 = vmatprep.subr.bf16.mxu1 %v1733_v1 }
 0x77d   : > { %v1727_v61 = vpop.permute.xlu1 %1726  ;;  %v1850_v6 = vpop.permute.xlu0 %1849 }
 0x77e   : > { %v1732_v2 = vsel %vm604_vm8, %v1727_v61, %v1729_v4 }
 0x77f   : > { %1740 = vmatpush1.bf16.msra.mxu1 %v1732_v2 }
 0x780   : > { %1790 = vmatprep.subr.bf16.mxu1 %v1713_v3 }
 0x781   : > { %v1852_v8 = vpop.permute.xlu1 %1851  ;;  %v1848_v45 = vpop.permute.xlu0 %1847 }
 0x782   : > { %2880 = vmatmul.mubr.msk.bf16.vlgmr.msra.gmra.mrb[8].mxu1 %vm814_vm6, %v3148_v5  ;;  %v1854_v10 = vsel %vm749_vm12, %v1850_v6, %v1852_v8  ;;  %v1853_v11 = vsel %vm749_vm12, %v1848_v45, %v1850_v6 }
 0x783   : > { %1791 = vmatpush1.bf16.msra.mxu1 %v1712_v44  ;;  %1822 = vmatprep.mubr.bf16.mxu1 %v3267_v18 }
 0x784   : > { %1860 = vmatprep.subr.bf16.mxu1 %v1854_v10 }
 0x785   : > { %v1924_v47 = vpop.permute.xlu1 %1923  ;;  %v1926_v48 = vpop.permute.xlu0 %1925 }
 0x786   : > { %v1928_v16 = vsel %vm839_vm14, %v1924_v47, %v1926_v48 }
 0x789   : > { %v1922_v12 = vpop.permute.xlu1 %1921  ;;  %v1992_v14 = vpop.permute.xlu0 %1991 }
 0x78a   : > { %v1927_v19 = vsel %vm839_vm14, %v1922_v12, %v1924_v47 }
 0x78d   : > { %v1994_v15 = vpop.permute.xlu1 %1993  ;;  %v1990_v22 = vpop.permute.xlu0 %1989 }
 0x78e   : > { %2882 = vmatmul.mubr.msk.bf16.vlgmr.msra.gmra.mrb[8].mxu1 %vm814_vm6, %v3149_v17  ;;  %v1996_v20 = vsel %vm912_vm15, %v1992_v14, %v1994_v15  ;;  %v1995_v29 = vsel %vm912_vm15, %v1990_v22, %v1992_v14 }
 0x78f   : > { %1861 = vmatpush1.bf16.msra.mxu1 %v1853_v11  ;;  %1892 = vmatprep.mubr.bf16.mxu1 %v3267_v18 }
 0x790   : > { %1934 = vmatprep.subr.bf16.mxu1 %v1928_v16 }
 0x791   : > { %v2066_v24 = vpop.permute.xlu1 %2065  ;;  %v2068_v27 = vpop.permute.xlu0 %2067 }
 0x792   : > { %v2070_v32 = vsel %vm1000_vm0, %v2066_v24, %v2068_v27 }
 0x795   : > { %v2064_v34 = vpop.permute.xlu1 %2063  ;;  %v2140_v38 = vpop.permute.xlu0 %2139 }
 0x796   : > { %v2069_v42 = vsel %vm1000_vm0, %v2064_v34, %v2066_v24  ;;  %v2613_v34 = vld [vmem:[%s3926_s12] sm:$0xff] }
 0x799   : > { %v2142_v41 = vpop.permute.xlu1 %2141  ;;  %v2138_v46 = vpop.permute.xlu0 %2137 }
 0x79a   : > { %2886 = vmatmul.mubr.msk.bf16.vlgmr.msra.gmra.mrb[8].mxu1 %vm814_vm6, %v3150_v13  ;;  %v2144_v43 = vsel %vm1088_vm1, %v2140_v38, %v2142_v41  ;;  %v2143_v55 = vsel %vm1088_vm1, %v2138_v46, %v2140_v38  ;;  %v2356_v46 = vld [vmem:[%s3923_s9 + $0x8] sm:$0xff] }
 0x79b   : > { %1935 = vmatpush1.bf16.msra.mxu1 %v1927_v19  ;;  %1966 = vmatprep.mubr.bf16.mxu1 %v3267_v18 }
 0x79c   : > { %2002 = vmatprep.subr.bf16.mxu1 %v1996_v20  ;;  %v2354_v20 = vld [vmem:[%s3922_s8 + $0x8] sm:$0xff] }
 0x79d   : > { %v2208_v50 = vpop.permute.xlu1 %2207  ;;  %v2210_v53 = vpop.permute.xlu0 %2209 }
 0x79e   : > { %v2212_v56 = vsel %vm1161_vm2, %v2208_v50, %v2210_v53 }
 0x7a1   : > { %v2206_v57 = vpop.permute.xlu1 %2205  ;;  %v2282_v62 = vpop.permute.xlu0 %2281 }
 0x7a2   : > { %v2211_v60 = vsel %vm1161_vm2, %v2206_v57, %v2208_v50  ;;  %v2616_v50 = vld [vmem:[%s3927_s13 + $0x8] sm:$0xff] }
 0x7a5   : > { %v2284_v59 = vpop.permute.xlu1 %2283  ;;  %v2280_v21 = vpop.permute.xlu0 %2279 }
 0x7a6   : > { %2890 = vmatmul.mubr.msk.bf16.vlgmr.msra.gmra.mrb[8].mxu1 %vm814_vm6, %v3151_v23  ;;  %v2286_v63 = vsel %vm1249_vm3, %v2282_v62, %v2284_v59  ;;  %v2285_v25 = vsel %vm1249_vm3, %v2280_v21, %v2282_v62 }
 0x7a7   : > { %2003 = vmatpush1.bf16.msra.mxu1 %v1995_v29  ;;  %2034 = vmatprep.mubr.bf16.mxu1 %v3267_v18 }
 0x7a8   : > { %2076 = vmatprep.subr.bf16.mxu1 %v2070_v32  ;;  %v3197_v32 = vld [vmem:[%s3416_s25] sm:$0xff]  ;;  %s502_s25 = scalar_lea.vmem [#allocation2], %s2815_s0  ;;  %s3202_s0 = sshll.u32 %s3278_s23, 4  ;;  %s3203_s0 = int_to_ptr.vmem [resolvable:$false] %s3202_s0 }
 0x7a9   : > { %s2737_s20 = sshll.u32 %s502_s25, 4  ;;  %s3204_s1 = scalar_lea.vmem %s3203_s0, 1024  ;;  %s3865_s20 = int_to_ptr.vmem [resolvable:$true] %s2737_s20 }
 0x7aa   : > { %s3198_s26 = scalar_lea.vmem %s3865_s20, 512  ;;  %p3205_p0 = scmp.lt.s32.totalorder %s3865_s20, %s3203_s0 }
 0x7ab   : > { %p3199_p11 = scmp.ne.s32.totalorder %s3865_s20, %s3198_s26  ;;  %p3206_p1 = scmp.lt.s32.totalorder %s3204_s1, %s3198_s26 }
 0x7ad   : > { %p3200_p12 = pnand %p3199_p11, %p3398_p5  ;;  %p3207_p2 = por %p3206_p1, %p3205_p0 }
 0x7af   : > { %p3201_p13 = pneg %p3200_p12 }
 0x7b1   : > { %p3208_p3 = pnand %p3207_p2, %p3201_p13 }
 0x7b2   : > { %2894 = vmatmul.mubr.msk.bf16.vlgmr.msra.gmra.mrb[8].mxu1 %vm814_vm6, %v3152_v35  ;;  %v2614_v35 = vld [vmem:[%s3926_s12 + $0x8] sm:$0xff] }
 0x7b3   : > { %2077 = vmatpush1.bf16.msra.mxu1 %v2069_v42  ;;  %2108 = vmatprep.mubr.bf16.mxu1 %v3267_v18 }
 0x7b4   : > { %2150 = vmatprep.subr.bf16.mxu1 %v2144_v43 }
 0x7b6   : > { %v2342_v30 = vpop.permute.xlu1 %2341  ;;  %v2347_v37 = vpop.permute.xlu0 %2346 }
 0x7be   : > { %2898 = vmatmul.mubr.msk.bf16.vlgmr.msra.gmra.mrb[8].mxu1 %vm814_vm6, %v3153_v49  ;;  %v2615_v49 = vld [vmem:[%s3927_s13] sm:$0xff] }
 0x7bf   : > { %2151 = vmatpush1.bf16.msra.mxu1 %v2143_v55  ;;  %2182 = vmatprep.mubr.bf16.mxu1 %v3267_v18 }
 0x7c0   : > { %2218 = vmatprep.subr.bf16.mxu1 %v2212_v56 }
 0x7ca   : > { %2902 = vmatmul.mubr.msk.bf16.vlgmr.msra.gmra.mrb[8].mxu1 %vm814_vm6, %v3154_v58 }
 0x7cb   : > { %2219 = vmatpush1.bf16.msra.mxu1 %v2211_v60  ;;  %2250 = vmatprep.mubr.bf16.mxu1 %v3267_v18 }
 0x7cc   : > { %2292 = vmatprep.subr.bf16.mxu1 %v2286_v63 }
 0x7d6   : > { %2906 = vmatmul.mubr.msk.bf16.vlgmr.msra.gmra.mrb[8].mxu1 %vm814_vm6, %v3155_v26 }
 0x7d7   : > { %2293 = vmatpush1.bf16.msra.mxu1 %v2285_v25  ;;  %2324 = vmatprep.mubr.bf16.mxu1 %v3267_v18 }
 0x7e2   : > { %2910 = vmatmul.mubr.msk.bf16.vlgmr.msra.gmra.mrb[8].mxu1 %vm814_vm6, %v3156_v31 }
 0x8b5   : > { %v2326_v33 = vpop.f32.mrb[8].mxu1 }
 0x8b6   : > { %v2349_v0 = vadd.f32 %v2342_v30, %v2326_v33  ;;  %v2328_v36 = vpop.f32.mrb[9].mxu1 }
 0x8b7   : > { %v2350_v39 = vadd.f32 %v2342_v30, %v2328_v36  ;;  %v2330_v51 = vpop.f32.mrb[10].mxu1 }
 0x8b8   : > { %v2351_v52 = vadd.f32 %v2347_v37, %v2330_v51  ;;  %v2332_v54 = vpop.f32.mrb[11].mxu1 }
 0x8b9   : > { %v2352_v4 = vadd.f32 %v2347_v37, %v2332_v54  ;;  %v2357_v1 = vadd.f32 %v2350_v39, %v2349_v0 }
 0x8bb   : > { %2358 = vadd.xlane.f32.xlu1 %v2357_v1  ;;  %v2360_v61 = vadd.f32 %v2352_v4, %v2351_v52 }
 0x8bd   : > { %2361 = vadd.xlane.f32.xlu0 %v2360_v61 }
 0x948   : > { %v2359_v18 = vpop.xlane.xlu1 %2358 }
 0x949   : > { %v2363_v3 = vmul.f32 0.00390625, %v2359_v18 }
 0x94a   : > { %v2362_v2 = vpop.xlane.xlu0 %2361 }
 0x94b   : > { %v2364_v5 = vmul.f32 0.00390625, %v2362_v2 }
 0x94d   : > { %v3008_v6 = vpack.c.bf16 %v2364_v5, %v2363_v3 }
 0x94f   : > { %3009 = vmatprep.subr.bf16.mxu0 %v3008_v6 }
 0x950   : > { %3011 = vmatpush3.bf16.msra.mxu0 %v3008_v6 }
 0x953   : > { %2983 = vmatmul.mubr.msk.f32.vlgmr.msra.gmra.mrb[4].mxu0 %vm814_vm6, %v3656_v40 }
 0x954   : > { %2989 = vmatprep.mubr.msk.f32.mxu0 %vm814_vm6, %v3647_v28  ;;  %v2353_v28 = vld [vmem:[%s3922_s8] sm:$0xff] }
 0xa26   : > { %v2984_v8 = vpop.f32.mrb[4].mxu0 }
 0xa27   : > { %2447 = vperm.xlu1 %3137, %v2984_v8   ;;  %v2431_v44 = vpop.f32.mrb[5].mxu0 }
 0xa28   : > { %2442 = vperm.xlu0 %3136, %v2431_v44  }
 0xaa6   : > { %v2448_v10 = vpop.permute.xlu1 %2447 }
 0xaa7   : > { %v2452_v45 = vsub.f32 %v2351_v52, %v2448_v10  ;;  %v2453_v17 = vsub.f32 %v2352_v4, %v2448_v10  ;;  %v2443_v47 = vpop.permute.xlu0 %2442 }
 0xaa8   : > { %v2450_v48 = vsub.f32 %v2349_v0, %v2443_v47  ;;  %v2451_v11 = vsub.f32 %v2350_v39, %v2443_v47 }
 0xaa9   : > { %v2456_v16 = vmul.f32 %v2452_v45, %v2452_v45  ;;  %v2457_v12 = vmul.f32 %v2453_v17, %v2453_v17 }
 0xaaa   : > { %v2454_v13 = vmul.f32 %v2450_v48, %v2450_v48  ;;  %v2455_v14 = vmul.f32 %v2451_v11, %v2451_v11 }
 0xaab   : > { %v2461_v15 = vadd.f32 %v2457_v12, %v2456_v16 }
 0xaac   : > { %v2458_v19 = vadd.f32 %v2455_v14, %v2454_v13 }
 0xaad   : > { %2462 = vadd.xlane.f32.xlu0 %v2461_v15 }
 0xaae   : > { %2459 = vadd.xlane.f32.xlu1 %v2458_v19 }
 0xabf   : > { %2559 = vperm.xlu1 %3137, %v2353_v28  }
 0xac3   : > { %2564 = vperm.xlu0 %3136, %v2354_v20  }
 0xb3a   : > { %v2463_v22 = vpop.xlane.xlu0 %2462 }
 0xb3b   : > { %v2465_v23 = vmul.f32 0.00390625, %v2463_v22  ;;  %v2460_v24 = vpop.xlane.xlu1 %2459 }
 0xb3c   : > { %v2464_v27 = vmul.f32 0.00390625, %v2460_v24 }
 0xb3e   : > { %v3012_v29 = vpack.c.bf16 %v2465_v23, %v2464_v27 }
 0xb3f   : > { %v2560_v58 = vpop.permute.xlu1 %2559 }
 0xb40   : > { %3013 = vmatprep.subr.bf16.mxu0 %v3012_v29 }
 0xb41   : > { %3015 = vmatpush3.bf16.msra.mxu0 %v3012_v29 }
 0xb42   : > { %2919 = vmatprep.subr.msk.mxu0 %vm2633_vm4, %v3420_v9  ;;  %v2565_v59 = vpop.permute.xlu0 %2564 }
 0xb44   : > { %2990 = vmatmul.mubr.msk.f32.vlgmr.msra.gmra.mrb[6].mxu0 %vm814_vm6, %v3656_v40 }
 0xb45   : > { %2920 = vmatpush1.msk.msra.mxu0 %vm2633_vm4, %v3197_v32  ;;  %2702 = vmatprep.mubr.f32.mxu0 %v3262_v7 }
 0xb48   : > { %2921 = vmatmul.mubr.msk.f32.vlgmr.msra.gmra.mrb[8].mxu0 %vm607_vm11, %v2613_v34 }
 0xb49   : > { %2708 = vmatprep.mubr.f32.mxu0 %v3262_v7  ;;  %v2355_v7 = vld [vmem:[%s3923_s9] sm:$0xff] }
 0xb4c   : > { %2922 = vmatmul.mubr.msk.f32.gmra.mrb[10].mxu0 %vm607_vm11, %v2614_v35 }
 0xc17   : > { %v2991_v9 = vpop.f32.mrb[6].mxu0 }
 0xc18   : > { %v2538_v40 = vadd.f32 1e-05, %v2991_v9  ;;  %v2532_v38 = vpop.f32.mrb[7].mxu0 }
 0xc19   : > { %v2533_v41 = vadd.f32 1e-05, %v2532_v38 }
 0xc1a   : > { %3177 = vrsqrt.f32 %v2538_v40 }
 0xc1b   : > { %3179 = vrsqrt.f32 %v2533_v41  ;;  %v2704_v53 = vpop.f32.mrb[8].mxu0 }
 0xc1c   : > { %v2706_v55 = vpop.f32.mrb[9].mxu0 }
 0xc1f   : > { %v2710_v56 = vpop.f32.mrb[10].mxu0 }
 0xc20   : > { %v2712_v57 = vpop.f32.mrb[11].mxu0 }
 0xc24   : > { %v3178_v42 = vpop.eup %3177 }
 0xc25   : > { %v3180_v43 = vpop.eup %3179  ;;  %2550 = vperm.xlu1 %3137, %v3178_v42  }
 0xc26   : > { %2545 = vperm.xlu0 %3136, %v3180_v43  }
 0xc29   : > { %2573 = vperm.xlu1 %3137, %v2355_v7  }
 0xc2a   : > { %2578 = vperm.xlu0 %3136, %v2356_v46  }
 0xc2d   : > { %2619 = vperm.xlu1 %3137, %v2615_v49  }
 0xc2e   : > { %2624 = vperm.xlu0 %3136, %v2616_v50  }
 0xca4   : > { %v2551_v60 = vpop.permute.xlu1 %2550 }
 0xca5   : > { %v2555_v62 = vmul.f32 %v2551_v60, %v2452_v45  ;;  %v2556_v63 = vmul.f32 %v2551_v60, %v2453_v17  ;;  %v2546_v26 = vpop.permute.xlu0 %2545 }
 0xca6   : > { %v2553_v21 = vmul.f32 %v2546_v26, %v2450_v48  ;;  %v2554_v25 = vmul.f32 %v2546_v26, %v2451_v11 }
 0xca7   : > { %v2569_v31 = vmul.f32 %v2565_v59, %v2555_v62  ;;  %v2570_v30 = vmul.f32 %v2565_v59, %v2556_v63 }
 0xca8   : > { %v2574_v33 = vpop.permute.xlu1 %2573  ;;  %v2567_v0 = vmul.f32 %v2560_v58, %v2553_v21  ;;  %v2568_v36 = vmul.f32 %v2560_v58, %v2554_v25 }
 0xca9   : > { %v2579_v37 = vpop.permute.xlu0 %2578 }
 0xcaa   : > { %v2581_v39 = vadd.f32 %v2574_v33, %v2567_v0  ;;  %v2582_v51 = vadd.f32 %v2574_v33, %v2568_v36  ;;  %v2583_v52 = vadd.f32 %v2579_v37, %v2569_v31  ;;  %v2584_v54 = vadd.f32 %v2579_v37, %v2570_v30 }
 0xcac   : > { %v2915_v4 = vmul.f32 -1.442695, %v2581_v39  ;;  %v2916_v1 = vmul.f32 -1.442695, %v2582_v51  ;;  %v2917_v61 = vmul.f32 -1.442695, %v2583_v52  ;;  %v2620_v17 = vpop.permute.xlu1 %2619 }
 0xcad   : > { %v2918_v18 = vmul.f32 -1.442695, %v2584_v54  ;;  %v2625_v48 = vpop.permute.xlu0 %2624  ;;  %v2705_v12 = vadd.f32 %v2704_v53, %v2620_v17  ;;  %v2707_v15 = vadd.f32 %v2706_v55, %v2620_v17 }
 0xcae   : > { %3181 = vpow2.f32 %v2915_v4  ;;  %v2711_v22 = vadd.f32 %v2710_v56, %v2625_v48  ;;  %v2713_v27 = vadd.f32 %v2712_v57, %v2625_v48 }
 0xcaf   : > { %3183 = vpow2.f32 %v2916_v1 }
 0xcb0   : > { %3185 = vpow2.f32 %v2917_v61 }
 0xcb1   : > { %3187 = vpow2.f32 %v2918_v18 }
 0xcb8   : > { %v3182_v2 = vpop.eup %3181 }
 0xcb9   : > { %v3184_v3 = vpop.eup %3183  ;;  %v2597_v5 = vadd.f32 1.0, %v3182_v2 }
 0xcba   : > { %v3186_v6 = vpop.eup %3185  ;;  %v2598_v8 = vadd.f32 1.0, %v3184_v3 }
 0xcbb   : > { %v3188_v44 = vpop.eup %3187  ;;  %3189 = vrcp.f32 %v2597_v5  ;;  %v2599_v10 = vadd.f32 1.0, %v3186_v6 }
 0xcbc   : > { %3191 = vrcp.f32 %v2598_v8  ;;  %v2600_v45 = vadd.f32 1.0, %v3188_v44 }
 0xcbd   : > { %3193 = vrcp.f32 %v2599_v10 }
 0xcbe   : > { %3195 = vrcp.f32 %v2600_v45 }
 0xcc5   : > { %v3190_v47 = vpop.eup %3189 }
 0xcc6   : > { %v3192_v11 = vpop.eup %3191  ;;  %v2609_v16 = vmul.f32 %v3190_v47, %v2581_v39 }
 0xcc7   : > { %v3194_v13 = vpop.eup %3193  ;;  %v2610_v14 = vmul.f32 %v3192_v11, %v2582_v51 }
 0xcc8   : > { %v3196_v19 = vpop.eup %3195  ;;  %v2611_v28 = vmul.f32 %v3194_v13, %v2583_v52  ;;  %v2715_v20 = vadd.f32 %v2705_v12, %v2609_v16 }
 0xcc9   : > { %v2612_v23 = vmul.f32 %v3196_v19, %v2584_v54  ;;  %v2716_v24 = vadd.f32 %v2707_v15, %v2610_v14 }
 0xcca   : > { %2719 = vst [vmem:[%s502_s25] sm:$0xff] %v2715_v20  ;;  %v2717_v29 = vadd.f32 %v2711_v22, %v2611_v28 }
 0xccb   : > { %2720 = vst [vmem:[%s502_s25 + $0x8] sm:$0xff] %v2716_v24  ;;  %v2718_v32 = vadd.f32 %v2713_v27, %v2612_v23 }
 0xccc   : > { %2721 = vst [vmem:[%s502_s25 + $0x10] sm:$0xff] %v2717_v29 }
 0xccd   : > { %2722 = vst [vmem:[%s502_s25 + $0x18] sm:$0xff] %v2718_v32 }
 0xcce   : > { %3211 = shalt.err (!%p3208_p3)
}
 0xccf   : > { %s3212_s2 = scalar_lea.hbm %s3870_s30, 512  ;;  %s3216_s17 = scalar_lea.hbm %s3929_s15, 1024 }
 0xcd0   : > { %p3213_p4 = scmp.ne.s32.totalorder %s3870_s30, %s3212_s2  ;;  %p3217_p9 = scmp.lt.u32.totalorder %s3870_s30, %s3929_s15 }
 0xcd1   : > { %p3218_p10 = scmp.lt.u32.totalorder %s3216_s17, %s3212_s2  ;;  %p3220_p12 = scmp.lt.u32.totalorder %s3212_s2, %s3870_s30 }
 0xcd2   : > { %p3214_p7 = pnand %p3213_p4, %p3398_p5 }
 0xcd3   : > { %p3219_p11 = por %p3218_p10, %p3217_p9 }
 0xcd4   : > { %p3215_p8 = pneg %p3214_p7 }
 0xcd5   : > { %p3221_p13 = por %p3220_p12, %p3219_p11 }
 0xcd7   : > { %p3222_p0 = pnand %p3221_p13, %p3215_p8 }
 0xcd9   : > { %3225 = shalt.err (!%p3222_p0)
}
 0xcda   : > { %s3279_s1 = smov 256   ;;  %s3969_s26 = smov 16  }
 0xcdb   : > { %3080 = dma.vmem_to_hbm [thread:$0]  (%p3398_p5), %s3865_s20, 512, %s3870_s30, %s3872_s22, %s3279_s1, %s3279_s1, %s3969_s26  }
 0xcdc PF: > { %p3086_p1 = scmp.ge.s32.totalorder %s3260_s21, 2  ;;  %s2752_s0 = sand.u32 1, %s3248_s18  }
 0xcdd   : > { %s2753_s2 = scalar_lea.sflag [#allocation3], %s2752_s0 }
 0xcde   : > { %p3083_p2 = pnand %p3086_p1, %p3402_p6 }
 0xce0   : > { %3243 = dma.done.wait (!%p3083_p2), %s2753_s2, 512  }
 0xce1   : > { %3245 = vsyncadd (!%p3083_p2), %s2753_s2, 4294966784  ;;  %s3970_s25 = sld [smem:[#allocation5_spill]]  ;;  %s3971_s20 = sld [smem:[#allocation6_spill]] }
 0xce2   : > { %p25_p3 = scmp.ge.s32.totalorder %s3385_s24, 4   ;;  %s3972_s18 = smov %s3252_s19 }
 0xce3   : > { %s3974_s21 = smov %s3385_s24 }
 0xce4   :  { %27 = sbr.rel (!%p25_p3) target bundleno = 7 (0x7), region = 134 }
 0xce7   : > { %s3973_s19 = smov %s3970_s25 }
 0xceb   :  { %2758 = vsyncpa [#allocation3], 1 }
 0xcec   :  { %2760 = vsyncpa [#allocation3 + $0x1], 1 }

</bundles_post_ra>
